<compile_context>
chip_gen: v5e
topology: v5e:2x2
jax: 0.10.0
libtpu: 0.0.40
codegen_flags: <defaults>
</compile_context>

<pallas_src>
import math

import jax
import jax.numpy as jnp
from jax.experimental import pallas as pl

# ---- small config consistent with the module (real model: F=512, hidden=96) ----
B = 2             # batch
F_DIM = 128       # num_features
H = W = 8         # encoder output spatial size
HW = H * W
NG = 20           # gcn_fea_num (support/prompt rows)
N = NG + 1        # graph nodes = support rows + query feature
HIDDEN = 32       # MLP hidden
RATIO = (2, 2, 1, 1)
C1, C2, C3, C4 = [HIDDEN * r for r in RATIO]
MLP_PAD = 128     # lane-pad all MLP channels to a dense 128-wide layout
NUM_CLASSES = 16
PRETRAIN = 8
META = 8
CLS_OUT = META + (NUM_CLASSES - PRETRAIN)
LEAKY_SLOPE = 0.01   # nn.LeakyReLU default
EPS = 1e-12          # F.normalize default eps


# ----------------------------- fused Pallas kernel -----------------------------

def _mynet_fused_kernel(x_ref, supn_ref, sup_ref,
                        w1_ref, sh1_ref, w2_ref, sh2_ref,
                        w3_ref, sh3_ref, w4_ref, sh4_ref,
                        wl_ref, bl_ref,
                        gw_ref, gb_ref, wcls_ref,
                        o_ref):
    bsz = x_ref.shape[0]

    def l2norm(v):
        n = jnp.sqrt(jnp.sum(v * v, axis=-1, keepdims=True))
        return v / jnp.maximum(n, EPS)

    def layer(h, w_ref, sh_ref):
        y = jnp.dot(h, w_ref[...], preferred_element_type=jnp.float32) + sh_ref[...]
        return jnp.where(y >= 0, y, LEAKY_SLOPE * y)

    # ---- get_feature: adaptive_avg_pool2d(., 1) == mean over the spatial (lane) axis ----
    feat = jnp.mean(x_ref[...], axis=-1)                     # (B, F)  raw query features
    qn_all = l2norm(feat)                                     # (B, F)  normalized

    supn = supn_ref[...]                                      # (NG, F) pre-normalized support rows
    sup = sup_ref[...]                                        # (NG, F) raw support rows
    wl = wl_ref[...]                                          # (1, 128) lane-padded conv_last row
    bl = bl_ref[...]                                          # (1, 1)

    xq_rows = []
    for b in range(bsz):          # B=2, unrolled: one program, weights loaded once
        q = feat[b:b + 1, :]                                  # (1, F)
        qn = qn_all[b:b + 1, :]                               # (1, F)

        # Pairwise features for adjacency row N-1 against the NG support rows only.
        # The (N-1, N-1) self pair is skipped: its score is zeroed by the softmax mask.
        h = supn * qn                                         # (NG, F)
        h = layer(h, w1_ref, sh1_ref)
        h = layer(h, w2_ref, sh2_ref)
        h = layer(h, w3_ref, sh3_ref)
        h = layer(h, w4_ref, sh4_ref)                         # (NG, 128), padded cols stay 0
        scores = jnp.sum(h * wl, axis=-1, keepdims=True) + bl  # (NG, 1) = mat[N-1, :NG]

        # Masked softmax of [scores; 0] (the 0 is the masked diagonal entry), plus the
        # identity contribution on the query slot.
        m = jnp.maximum(jnp.max(scores, axis=0, keepdims=True), 0.0)   # (1, 1)
        e = jnp.exp(scores - m)                                        # (NG, 1)
        e_q = jnp.exp(-m)                                              # (1, 1)
        inv_z = pl.reciprocal(jnp.sum(e, axis=0, keepdims=True) + e_q, approx=True)
        adj_sup = e * inv_z                                            # (NG, 1) adj[N-1, :NG]
        adj_q = e_q * inv_z + 1.0                                      # (1, 1)  adj[N-1, N-1]

        # GraphConvolution, reassociated: xq = adj_row @ x done as a cheap weighted sum.
        xq_rows.append(jnp.sum(adj_sup * sup, axis=0, keepdims=True) + adj_q * q)   # (1, F)

    # ---- shared tail for the whole batch ----
    xq = jnp.concatenate(xq_rows, axis=0)                              # (B, F)
    agg = jnp.dot(xq, gw_ref[...], preferred_element_type=jnp.float32) + gb_ref[...]
    hq = jnp.maximum(agg, 0.0) + feat                                  # relu + residual (x[N-1] = feat)

    # cosine classifier: [norm(prom)[:META]; norm(dummy)]
    qcls = l2norm(hq)
    o_ref[...] = jnp.dot(qcls, wcls_ref[...], preferred_element_type=jnp.float32)   # (B, CLS_OUT)


# ------------------------------ wrapper -----------------------------------

def mynet_forward(data_nchw, params):
    b, c, h, w = data_nchw.shape
    # Free reshape (no HBM transpose roundtrip): spatial on the lane axis, pooled in-kernel.
    x = data_nchw.reshape(b, c, h * w)
    mp = params['mlp']
    args = (x, params['sup_norm'], params['gcn_feature_w'],
            mp['w1p'], mp['sh1p'], mp['w2p'], mp['sh2p'],
            mp['w3p'], mp['sh3p'], mp['w4p'], mp['sh4p'],
            mp['wlp'], mp['bl'],
            params['gcn_w'], params['gcn_b'], params['wcls'])
    # Single program (no grid): whole-array VMEM blocks, total footprint ~0.45 MiB.
    return pl.pallas_call(
        _mynet_fused_kernel,
        out_shape=jax.ShapeDtypeStruct((b, CLS_OUT), jnp.float32),
    )(*args)


# ----------------------------- parameters ----------------------------------

def init_params(key):
    ks = jax.random.split(key, 16)

    def unif(k, shape, scale):
        return jax.random.uniform(k, shape, jnp.float32, -scale, scale)

    def l2n(wt):
        return wt / jnp.maximum(jnp.linalg.norm(wt, axis=-1, keepdims=True), EPS)

    p = {}
    # gcn_feature / prom_classifier / fc (orthogonal init replaced by deterministic normals)
    p['gcn_feature_w'] = 0.1 * jax.random.normal(ks[0], (NG, F_DIM), jnp.float32)
    p['sup_norm'] = l2n(p['gcn_feature_w'])                      # hoisted support normalization
    prom_w = jax.random.normal(ks[1], (NUM_CLASSES, F_DIM), jnp.float32)
    fc_w = jax.random.normal(ks[2], (NUM_CLASSES, F_DIM), jnp.float32)
    dummy_w = fc_w[PRETRAIN:]                                    # dummy_orthogonal_classifier
    # cat([x1[:, :META], x2], -1)  ==  qn @ [norm(prom)[:META]; norm(dummy)].T
    p['wcls'] = jnp.concatenate([l2n(prom_w)[:META], l2n(dummy_w)], axis=0).T   # (F, CLS_OUT)

    # GraphConvolution: uniform(-stdv, stdv), stdv = 1/sqrt(out_features)
    stdv = 1.0 / math.sqrt(F_DIM)
    p['gcn_w'] = unif(ks[3], (F_DIM, F_DIM), stdv)
    p['gcn_b'] = unif(ks[4], (1, F_DIM), stdv)

    # MLP: 1x1 conv weights + eval-mode BatchNorm.  The kernel consumes BN-scale-folded,
    # lane-padded weights (w{i}p / sh{i}p / wlp); the pure-JAX reference uses the raw
    # unfolded, unpadded ones (validates folding + padding are equivalent).
    mlp = {}
    dims = [(F_DIM, C1), (C1, C2), (C2, C3), (C3, C4)]
    for idx, (cin, cout) in enumerate(dims, start=1):
        kw, kg, kb = jax.random.split(ks[4 + idx], 3)
        wconv = jax.random.normal(kw, (cout, cin), jnp.float32) / math.sqrt(cin)
        gamma = 1.0 + 0.1 * jax.random.normal(kg, (cout,), jnp.float32)
        beta = 0.1 * jax.random.normal(kb, (cout,), jnp.float32)
        rmean = jnp.zeros((cout,), jnp.float32)
        rvar = jnp.ones((cout,), jnp.float32)
        scale = gamma / jnp.sqrt(rvar + 1e-5)
        shift = beta - rmean * scale
        mlp[f'w{idx}t'] = wconv.T                                # (cin, cout) raw (reference)
        mlp[f's{idx}'] = scale.reshape(1, cout)                  # (1, cout)   raw (reference)
        mlp[f'sh{idx}'] = shift.reshape(1, cout)                 # (1, cout)   raw (reference)
        wf = wconv.T * scale[None, :]                            # BN scale folded
        rows = max(cin, MLP_PAD)                                 # layer-1 rows = F_DIM
        mlp[f'w{idx}p'] = jnp.zeros((rows, MLP_PAD), jnp.float32).at[:cin, :cout].set(wf)
        mlp[f'sh{idx}p'] = jnp.zeros((1, MLP_PAD), jnp.float32).at[:, :cout].set(
            shift.reshape(1, cout))
    kl, kb2 = jax.random.split(ks[10], 2)
    wlast = jax.random.normal(kl, (1, C4), jnp.float32) / math.sqrt(C4)
    blast = 0.01 * jax.random.normal(kb2, (1, 1), jnp.float32)
    mlp['wl_row'] = wlast                                        # (1, C4)   raw (reference)
    mlp['bl'] = blast                                            # (1, 1)
    mlp['wlp'] = jnp.zeros((1, MLP_PAD), jnp.float32).at[:, :C4].set(wlast)   # lane-padded
    p['mlp'] = mlp
    return p


# -------------------------- pure-JAX reference ------------------------------
# Computes the FULL N*N pipeline exactly as the PyTorch module does (raw, unfolded,
# unpadded weights), then takes [:, -1, :]; the kernel's pruned computation must match.

def reference_forward(data_nchw, p):
    feat = data_nchw.mean(axis=(2, 3))
    support = jnp.broadcast_to(p['gcn_feature_w'][None], (data_nchw.shape[0], NG, F_DIM))
    x = jnp.concatenate([support, feat[:, None, :]], axis=1)
    xn = x / jnp.maximum(jnp.linalg.norm(x, axis=-1, keepdims=True), EPS)
    xij = xn[:, :, None, :] * xn[:, None, :, :]
    mp = p['mlp']
    h = xij
    for i in (1, 2, 3, 4):
        h = h @ mp[f'w{i}t'] * mp[f's{i}'][0] + mp[f'sh{i}'][0]
        h = jnp.where(h >= 0, h, LEAKY_SLOPE * h)
    mat = (h @ mp['wl_row'].T + mp['bl'][0])[..., 0]             # (B, N, N)
    eye = jnp.eye(N, dtype=jnp.float32)
    adj = jax.nn.softmax(mat * (1.0 - eye), axis=-1) + eye
    g = x @ p['gcn_w']
    g = jnp.einsum('bij,bjf->bif', adj, g) + p['gcn_b'][0]
    g = jnp.maximum(g, 0.0) + x
    q = g[:, -1, :]
    qn = q / jnp.maximum(jnp.linalg.norm(q, axis=-1, keepdims=True), EPS)
    return qn @ p['wcls']


# --------------------------------- main -------------------------------------

if __name__ == "__main__":
    key = jax.random.PRNGKey(0)
    kp, kd = jax.random.split(key)
    params = init_params(kp)
    # encoder stubbed: feed a (B, F, H, W) NCHW feature map directly
    data = jax.random.normal(kd, (B, F_DIM, H, W), jnp.float32)

    out = jax.block_until_ready(mynet_forward(data, params))
    ref = jax.block_until_ready(reference_forward(data, params))

    assert out.shape == (B, CLS_OUT), out.shape
    assert bool(jnp.all(jnp.isfinite(out)))
    assert jnp.allclose(out, ref, atol=2e-2, rtol=2e-2), float(jnp.max(jnp.abs(out - ref)))
    print("KERNEL_OK")
</pallas_src>

<mosaic_0001>
module attributes {stable_mosaic.version = 11 : i64} {
  func.func @_mynet_fused_kernel(%arg0: memref<2x128x64xf32, #tpu.memory_space<vmem>>, %arg1: memref<20x128xf32, #tpu.memory_space<vmem>>, %arg2: memref<20x128xf32, #tpu.memory_space<vmem>>, %arg3: memref<128x128xf32, #tpu.memory_space<vmem>>, %arg4: memref<1x128xf32, #tpu.memory_space<vmem>>, %arg5: memref<128x128xf32, #tpu.memory_space<vmem>>, %arg6: memref<1x128xf32, #tpu.memory_space<vmem>>, %arg7: memref<128x128xf32, #tpu.memory_space<vmem>>, %arg8: memref<1x128xf32, #tpu.memory_space<vmem>>, %arg9: memref<128x128xf32, #tpu.memory_space<vmem>>, %arg10: memref<1x128xf32, #tpu.memory_space<vmem>>, %arg11: memref<1x128xf32, #tpu.memory_space<vmem>>, %arg12: memref<1x1xf32, #tpu.memory_space<vmem>>, %arg13: memref<128x128xf32, #tpu.memory_space<vmem>>, %arg14: memref<1x128xf32, #tpu.memory_space<vmem>>, %arg15: memref<128x16xf32, #tpu.memory_space<vmem>>, %arg16: memref<2x16xf32, #tpu.memory_space<vmem>>) attributes {dimension_semantics = [], scalar_prefetch = 0 : i64, scratch_operands = 0 : i64, tpu.core_type = #tpu.core_type<tc>} {
    %c0 = arith.constant 0 : index
    %c0_0 = arith.constant 0 : index
    %c0_1 = arith.constant 0 : index
    %0 = vector.load %arg0[%c0, %c0_0, %c0_1] : memref<2x128x64xf32, #tpu.memory_space<vmem>>, vector<2x128x64xf32>
    %cst = arith.constant dense<0.000000e+00> : vector<2x128xf32>
    %1 = vector.multi_reduction <add>, %0, %cst [2] : vector<2x128x64xf32> to vector<2x128xf32>
    %cst_2 = arith.constant 6.400000e+01 : f32
    %2 = vector.broadcast %cst_2 : f32 to vector<2x128xf32>
    %3 = arith.divf %1, %2 : vector<2x128xf32>
    %4 = arith.mulf %3, %3 : vector<2x128xf32>
    %cst_3 = arith.constant dense<0.000000e+00> : vector<2xf32>
    %5 = vector.multi_reduction <add>, %4, %cst_3 [1] : vector<2x128xf32> to vector<2xf32>
    %6 = vector.shape_cast %5 : vector<2xf32> to vector<2x1xf32>
    %7 = math.sqrt %6 : vector<2x1xf32>
    %cst_4 = arith.constant 9.99999996E-13 : f32
    %8 = vector.broadcast %cst_4 : f32 to vector<2x1xf32>
    %9 = arith.maximumf %7, %8 : vector<2x1xf32>
    %10 = vector.broadcast %9 : vector<2x1xf32> to vector<2x128xf32>
    %11 = arith.divf %3, %10 : vector<2x128xf32>
    %c0_5 = arith.constant 0 : index
    %c0_6 = arith.constant 0 : index
    %12 = vector.load %arg1[%c0_5, %c0_6] : memref<20x128xf32, #tpu.memory_space<vmem>>, vector<20x128xf32>
    %c0_7 = arith.constant 0 : index
    %c0_8 = arith.constant 0 : index
    %13 = vector.load %arg2[%c0_7, %c0_8] : memref<20x128xf32, #tpu.memory_space<vmem>>, vector<20x128xf32>
    %c0_9 = arith.constant 0 : index
    %c0_10 = arith.constant 0 : index
    %14 = vector.load %arg11[%c0_9, %c0_10] : memref<1x128xf32, #tpu.memory_space<vmem>>, vector<1x128xf32>
    %c0_11 = arith.constant 0 : index
    %c0_12 = arith.constant 0 : index
    %15 = vector.load %arg12[%c0_11, %c0_12] : memref<1x1xf32, #tpu.memory_space<vmem>>, vector<1x1xf32>
    %16 = vector.extract_strided_slice %3 {offsets = [0, 0], sizes = [1, 128], strides = [1, 1]} : vector<2x128xf32> to vector<1x128xf32>
    %17 = vector.extract_strided_slice %11 {offsets = [0, 0], sizes = [1, 128], strides = [1, 1]} : vector<2x128xf32> to vector<1x128xf32>
    %18 = vector.broadcast %17 : vector<1x128xf32> to vector<20x128xf32>
    %19 = arith.mulf %12, %18 : vector<20x128xf32>
    %c0_13 = arith.constant 0 : index
    %c0_14 = arith.constant 0 : index
    %20 = vector.load %arg3[%c0_13, %c0_14] : memref<128x128xf32, #tpu.memory_space<vmem>>, vector<128x128xf32>
    %cst_15 = arith.constant dense<0.000000e+00> : vector<20x128xf32>
    %21 = tpu.matmul %19, %20, %cst_15 {dimension_numbers = #tpu.dot_dimension_numbers<[1], [0], [0], [1], [0, 0, 1, 1], [], []>} : vector<20x128xf32>, vector<128x128xf32>, vector<20x128xf32> -> vector<20x128xf32>
    %c0_16 = arith.constant 0 : index
    %c0_17 = arith.constant 0 : index
    %22 = vector.load %arg4[%c0_16, %c0_17] : memref<1x128xf32, #tpu.memory_space<vmem>>, vector<1x128xf32>
    %23 = vector.broadcast %22 : vector<1x128xf32> to vector<20x128xf32>
    %24 = arith.addf %21, %23 : vector<20x128xf32>
    %cst_18 = arith.constant 0.000000e+00 : f32
    %25 = vector.broadcast %cst_18 : f32 to vector<20x128xf32>
    %26 = arith.cmpf oge, %24, %25 : vector<20x128xf32>
    %cst_19 = arith.constant 0.00999999977 : f32
    %27 = vector.broadcast %cst_19 : f32 to vector<20x128xf32>
    %28 = arith.mulf %27, %24 : vector<20x128xf32>
    %29 = arith.select %26, %24, %28 : vector<20x128xi1>, vector<20x128xf32>
    %c0_20 = arith.constant 0 : index
    %c0_21 = arith.constant 0 : index
    %30 = vector.load %arg5[%c0_20, %c0_21] : memref<128x128xf32, #tpu.memory_space<vmem>>, vector<128x128xf32>
    %cst_22 = arith.constant dense<0.000000e+00> : vector<20x128xf32>
    %31 = tpu.matmul %29, %30, %cst_22 {dimension_numbers = #tpu.dot_dimension_numbers<[1], [0], [0], [1], [0, 0, 1, 1], [], []>} : vector<20x128xf32>, vector<128x128xf32>, vector<20x128xf32> -> vector<20x128xf32>
    %c0_23 = arith.constant 0 : index
    %c0_24 = arith.constant 0 : index
    %32 = vector.load %arg6[%c0_23, %c0_24] : memref<1x128xf32, #tpu.memory_space<vmem>>, vector<1x128xf32>
    %33 = vector.broadcast %32 : vector<1x128xf32> to vector<20x128xf32>
    %34 = arith.addf %31, %33 : vector<20x128xf32>
    %cst_25 = arith.constant 0.000000e+00 : f32
    %35 = vector.broadcast %cst_25 : f32 to vector<20x128xf32>
    %36 = arith.cmpf oge, %34, %35 : vector<20x128xf32>
    %cst_26 = arith.constant 0.00999999977 : f32
    %37 = vector.broadcast %cst_26 : f32 to vector<20x128xf32>
    %38 = arith.mulf %37, %34 : vector<20x128xf32>
    %39 = arith.select %36, %34, %38 : vector<20x128xi1>, vector<20x128xf32>
    %c0_27 = arith.constant 0 : index
    %c0_28 = arith.constant 0 : index
    %40 = vector.load %arg7[%c0_27, %c0_28] : memref<128x128xf32, #tpu.memory_space<vmem>>, vector<128x128xf32>
    %cst_29 = arith.constant dense<0.000000e+00> : vector<20x128xf32>
    %41 = tpu.matmul %39, %40, %cst_29 {dimension_numbers = #tpu.dot_dimension_numbers<[1], [0], [0], [1], [0, 0, 1, 1], [], []>} : vector<20x128xf32>, vector<128x128xf32>, vector<20x128xf32> -> vector<20x128xf32>
    %c0_30 = arith.constant 0 : index
    %c0_31 = arith.constant 0 : index
    %42 = vector.load %arg8[%c0_30, %c0_31] : memref<1x128xf32, #tpu.memory_space<vmem>>, vector<1x128xf32>
    %43 = vector.broadcast %42 : vector<1x128xf32> to vector<20x128xf32>
    %44 = arith.addf %41, %43 : vector<20x128xf32>
    %cst_32 = arith.constant 0.000000e+00 : f32
    %45 = vector.broadcast %cst_32 : f32 to vector<20x128xf32>
    %46 = arith.cmpf oge, %44, %45 : vector<20x128xf32>
    %cst_33 = arith.constant 0.00999999977 : f32
    %47 = vector.broadcast %cst_33 : f32 to vector<20x128xf32>
    %48 = arith.mulf %47, %44 : vector<20x128xf32>
    %49 = arith.select %46, %44, %48 : vector<20x128xi1>, vector<20x128xf32>
    %c0_34 = arith.constant 0 : index
    %c0_35 = arith.constant 0 : index
    %50 = vector.load %arg9[%c0_34, %c0_35] : memref<128x128xf32, #tpu.memory_space<vmem>>, vector<128x128xf32>
    %cst_36 = arith.constant dense<0.000000e+00> : vector<20x128xf32>
    %51 = tpu.matmul %49, %50, %cst_36 {dimension_numbers = #tpu.dot_dimension_numbers<[1], [0], [0], [1], [0, 0, 1, 1], [], []>} : vector<20x128xf32>, vector<128x128xf32>, vector<20x128xf32> -> vector<20x128xf32>
    %c0_37 = arith.constant 0 : index
    %c0_38 = arith.constant 0 : index
    %52 = vector.load %arg10[%c0_37, %c0_38] : memref<1x128xf32, #tpu.memory_space<vmem>>, vector<1x128xf32>
    %53 = vector.broadcast %52 : vector<1x128xf32> to vector<20x128xf32>
    %54 = arith.addf %51, %53 : vector<20x128xf32>
    %cst_39 = arith.constant 0.000000e+00 : f32
    %55 = vector.broadcast %cst_39 : f32 to vector<20x128xf32>
    %56 = arith.cmpf oge, %54, %55 : vector<20x128xf32>
    %cst_40 = arith.constant 0.00999999977 : f32
    %57 = vector.broadcast %cst_40 : f32 to vector<20x128xf32>
    %58 = arith.mulf %57, %54 : vector<20x128xf32>
    %59 = arith.select %56, %54, %58 : vector<20x128xi1>, vector<20x128xf32>
    %60 = vector.broadcast %14 : vector<1x128xf32> to vector<20x128xf32>
    %61 = arith.mulf %59, %60 : vector<20x128xf32>
    %cst_41 = arith.constant dense<0.000000e+00> : vector<20xf32>
    %62 = vector.multi_reduction <add>, %61, %cst_41 [1] : vector<20x128xf32> to vector<20xf32>
    %63 = vector.shape_cast %62 : vector<20xf32> to vector<20x1xf32>
    %64 = vector.broadcast %15 : vector<1x1xf32> to vector<20x1xf32>
    %65 = arith.addf %63, %64 : vector<20x1xf32>
    %cst_42 = arith.constant dense<0xFF800000> : vector<1xf32>
    %66 = vector.multi_reduction <maximumf>, %65, %cst_42 [0] : vector<20x1xf32> to vector<1xf32>
    %67 = vector.shape_cast %66 : vector<1xf32> to vector<1x1xf32>
    %cst_43 = arith.constant 0.000000e+00 : f32
    %68 = vector.broadcast %cst_43 : f32 to vector<1x1xf32>
    %69 = arith.maximumf %67, %68 : vector<1x1xf32>
    %70 = vector.broadcast %69 : vector<1x1xf32> to vector<20x1xf32>
    %71 = arith.subf %65, %70 : vector<20x1xf32>
    %72 = math.exp %71 : vector<20x1xf32>
    %cst_44 = arith.constant 0.000000e+00 : f32
    %73 = vector.broadcast %cst_44 : f32 to vector<1x1xf32>
    %74 = arith.subf %73, %69 : vector<1x1xf32>
    %75 = math.exp %74 : vector<1x1xf32>
    %cst_45 = arith.constant dense<0.000000e+00> : vector<1xf32>
    %76 = vector.multi_reduction <add>, %72, %cst_45 [0] : vector<20x1xf32> to vector<1xf32>
    %77 = vector.shape_cast %76 : vector<1xf32> to vector<1x1xf32>
    %78 = arith.addf %77, %75 : vector<1x1xf32>
    %79 = tpu.reciprocal %78 {approx = true} : vector<1x1xf32> -> vector<1x1xf32>
    %80 = vector.broadcast %79 : vector<1x1xf32> to vector<20x1xf32>
    %81 = arith.mulf %72, %80 : vector<20x1xf32>
    %82 = arith.mulf %75, %79 : vector<1x1xf32>
    %cst_46 = arith.constant 1.000000e+00 : f32
    %83 = vector.broadcast %cst_46 : f32 to vector<1x1xf32>
    %84 = arith.addf %82, %83 : vector<1x1xf32>
    %85 = vector.broadcast %81 : vector<20x1xf32> to vector<20x128xf32>
    %86 = arith.mulf %85, %13 : vector<20x128xf32>
    %cst_47 = arith.constant dense<0.000000e+00> : vector<128xf32>
    %87 = vector.multi_reduction <add>, %86, %cst_47 [0] : vector<20x128xf32> to vector<128xf32>
    %88 = vector.shape_cast %87 : vector<128xf32> to vector<1x128xf32>
    %89 = vector.broadcast %84 : vector<1x1xf32> to vector<1x128xf32>
    %90 = arith.mulf %89, %16 : vector<1x128xf32>
    %91 = arith.addf %88, %90 : vector<1x128xf32>
    %92 = vector.extract_strided_slice %3 {offsets = [1, 0], sizes = [1, 128], strides = [1, 1]} : vector<2x128xf32> to vector<1x128xf32>
    %93 = vector.extract_strided_slice %11 {offsets = [1, 0], sizes = [1, 128], strides = [1, 1]} : vector<2x128xf32> to vector<1x128xf32>
    %94 = vector.broadcast %93 : vector<1x128xf32> to vector<20x128xf32>
    %95 = arith.mulf %12, %94 : vector<20x128xf32>
    %c0_48 = arith.constant 0 : index
    %c0_49 = arith.constant 0 : index
    %96 = vector.load %arg3[%c0_48, %c0_49] : memref<128x128xf32, #tpu.memory_space<vmem>>, vector<128x128xf32>
    %cst_50 = arith.constant dense<0.000000e+00> : vector<20x128xf32>
    %97 = tpu.matmul %95, %96, %cst_50 {dimension_numbers = #tpu.dot_dimension_numbers<[1], [0], [0], [1], [0, 0, 1, 1], [], []>} : vector<20x128xf32>, vector<128x128xf32>, vector<20x128xf32> -> vector<20x128xf32>
    %c0_51 = arith.constant 0 : index
    %c0_52 = arith.constant 0 : index
    %98 = vector.load %arg4[%c0_51, %c0_52] : memref<1x128xf32, #tpu.memory_space<vmem>>, vector<1x128xf32>
    %99 = vector.broadcast %98 : vector<1x128xf32> to vector<20x128xf32>
    %100 = arith.addf %97, %99 : vector<20x128xf32>
    %cst_53 = arith.constant 0.000000e+00 : f32
    %101 = vector.broadcast %cst_53 : f32 to vector<20x128xf32>
    %102 = arith.cmpf oge, %100, %101 : vector<20x128xf32>
    %cst_54 = arith.constant 0.00999999977 : f32
    %103 = vector.broadcast %cst_54 : f32 to vector<20x128xf32>
    %104 = arith.mulf %103, %100 : vector<20x128xf32>
    %105 = arith.select %102, %100, %104 : vector<20x128xi1>, vector<20x128xf32>
    %c0_55 = arith.constant 0 : index
    %c0_56 = arith.constant 0 : index
    %106 = vector.load %arg5[%c0_55, %c0_56] : memref<128x128xf32, #tpu.memory_space<vmem>>, vector<128x128xf32>
    %cst_57 = arith.constant dense<0.000000e+00> : vector<20x128xf32>
    %107 = tpu.matmul %105, %106, %cst_57 {dimension_numbers = #tpu.dot_dimension_numbers<[1], [0], [0], [1], [0, 0, 1, 1], [], []>} : vector<20x128xf32>, vector<128x128xf32>, vector<20x128xf32> -> vector<20x128xf32>
    %c0_58 = arith.constant 0 : index
    %c0_59 = arith.constant 0 : index
    %108 = vector.load %arg6[%c0_58, %c0_59] : memref<1x128xf32, #tpu.memory_space<vmem>>, vector<1x128xf32>
    %109 = vector.broadcast %108 : vector<1x128xf32> to vector<20x128xf32>
    %110 = arith.addf %107, %109 : vector<20x128xf32>
    %cst_60 = arith.constant 0.000000e+00 : f32
    %111 = vector.broadcast %cst_60 : f32 to vector<20x128xf32>
    %112 = arith.cmpf oge, %110, %111 : vector<20x128xf32>
    %cst_61 = arith.constant 0.00999999977 : f32
    %113 = vector.broadcast %cst_61 : f32 to vector<20x128xf32>
    %114 = arith.mulf %113, %110 : vector<20x128xf32>
    %115 = arith.select %112, %110, %114 : vector<20x128xi1>, vector<20x128xf32>
    %c0_62 = arith.constant 0 : index
    %c0_63 = arith.constant 0 : index
    %116 = vector.load %arg7[%c0_62, %c0_63] : memref<128x128xf32, #tpu.memory_space<vmem>>, vector<128x128xf32>
    %cst_64 = arith.constant dense<0.000000e+00> : vector<20x128xf32>
    %117 = tpu.matmul %115, %116, %cst_64 {dimension_numbers = #tpu.dot_dimension_numbers<[1], [0], [0], [1], [0, 0, 1, 1], [], []>} : vector<20x128xf32>, vector<128x128xf32>, vector<20x128xf32> -> vector<20x128xf32>
    %c0_65 = arith.constant 0 : index
    %c0_66 = arith.constant 0 : index
    %118 = vector.load %arg8[%c0_65, %c0_66] : memref<1x128xf32, #tpu.memory_space<vmem>>, vector<1x128xf32>
    %119 = vector.broadcast %118 : vector<1x128xf32> to vector<20x128xf32>
    %120 = arith.addf %117, %119 : vector<20x128xf32>
    %cst_67 = arith.constant 0.000000e+00 : f32
    %121 = vector.broadcast %cst_67 : f32 to vector<20x128xf32>
    %122 = arith.cmpf oge, %120, %121 : vector<20x128xf32>
    %cst_68 = arith.constant 0.00999999977 : f32
    %123 = vector.broadcast %cst_68 : f32 to vector<20x128xf32>
    %124 = arith.mulf %123, %120 : vector<20x128xf32>
    %125 = arith.select %122, %120, %124 : vector<20x128xi1>, vector<20x128xf32>
    %c0_69 = arith.constant 0 : index
    %c0_70 = arith.constant 0 : index
    %126 = vector.load %arg9[%c0_69, %c0_70] : memref<128x128xf32, #tpu.memory_space<vmem>>, vector<128x128xf32>
    %cst_71 = arith.constant dense<0.000000e+00> : vector<20x128xf32>
    %127 = tpu.matmul %125, %126, %cst_71 {dimension_numbers = #tpu.dot_dimension_numbers<[1], [0], [0], [1], [0, 0, 1, 1], [], []>} : vector<20x128xf32>, vector<128x128xf32>, vector<20x128xf32> -> vector<20x128xf32>
    %c0_72 = arith.constant 0 : index
    %c0_73 = arith.constant 0 : index
    %128 = vector.load %arg10[%c0_72, %c0_73] : memref<1x128xf32, #tpu.memory_space<vmem>>, vector<1x128xf32>
    %129 = vector.broadcast %128 : vector<1x128xf32> to vector<20x128xf32>
    %130 = arith.addf %127, %129 : vector<20x128xf32>
    %cst_74 = arith.constant 0.000000e+00 : f32
    %131 = vector.broadcast %cst_74 : f32 to vector<20x128xf32>
    %132 = arith.cmpf oge, %130, %131 : vector<20x128xf32>
    %cst_75 = arith.constant 0.00999999977 : f32
    %133 = vector.broadcast %cst_75 : f32 to vector<20x128xf32>
    %134 = arith.mulf %133, %130 : vector<20x128xf32>
    %135 = arith.select %132, %130, %134 : vector<20x128xi1>, vector<20x128xf32>
    %136 = vector.broadcast %14 : vector<1x128xf32> to vector<20x128xf32>
    %137 = arith.mulf %135, %136 : vector<20x128xf32>
    %cst_76 = arith.constant dense<0.000000e+00> : vector<20xf32>
    %138 = vector.multi_reduction <add>, %137, %cst_76 [1] : vector<20x128xf32> to vector<20xf32>
    %139 = vector.shape_cast %138 : vector<20xf32> to vector<20x1xf32>
    %140 = vector.broadcast %15 : vector<1x1xf32> to vector<20x1xf32>
    %141 = arith.addf %139, %140 : vector<20x1xf32>
    %cst_77 = arith.constant dense<0xFF800000> : vector<1xf32>
    %142 = vector.multi_reduction <maximumf>, %141, %cst_77 [0] : vector<20x1xf32> to vector<1xf32>
    %143 = vector.shape_cast %142 : vector<1xf32> to vector<1x1xf32>
    %cst_78 = arith.constant 0.000000e+00 : f32
    %144 = vector.broadcast %cst_78 : f32 to vector<1x1xf32>
    %145 = arith.maximumf %143, %144 : vector<1x1xf32>
    %146 = vector.broadcast %145 : vector<1x1xf32> to vector<20x1xf32>
    %147 = arith.subf %141, %146 : vector<20x1xf32>
    %148 = math.exp %147 : vector<20x1xf32>
    %cst_79 = arith.constant 0.000000e+00 : f32
    %149 = vector.broadcast %cst_79 : f32 to vector<1x1xf32>
    %150 = arith.subf %149, %145 : vector<1x1xf32>
    %151 = math.exp %150 : vector<1x1xf32>
    %cst_80 = arith.constant dense<0.000000e+00> : vector<1xf32>
    %152 = vector.multi_reduction <add>, %148, %cst_80 [0] : vector<20x1xf32> to vector<1xf32>
    %153 = vector.shape_cast %152 : vector<1xf32> to vector<1x1xf32>
    %154 = arith.addf %153, %151 : vector<1x1xf32>
    %155 = tpu.reciprocal %154 {approx = true} : vector<1x1xf32> -> vector<1x1xf32>
    %156 = vector.broadcast %155 : vector<1x1xf32> to vector<20x1xf32>
    %157 = arith.mulf %148, %156 : vector<20x1xf32>
    %158 = arith.mulf %151, %155 : vector<1x1xf32>
    %cst_81 = arith.constant 1.000000e+00 : f32
    %159 = vector.broadcast %cst_81 : f32 to vector<1x1xf32>
    %160 = arith.addf %158, %159 : vector<1x1xf32>
    %161 = vector.broadcast %157 : vector<20x1xf32> to vector<20x128xf32>
    %162 = arith.mulf %161, %13 : vector<20x128xf32>
    %cst_82 = arith.constant dense<0.000000e+00> : vector<128xf32>
    %163 = vector.multi_reduction <add>, %162, %cst_82 [0] : vector<20x128xf32> to vector<128xf32>
    %164 = vector.shape_cast %163 : vector<128xf32> to vector<1x128xf32>
    %165 = vector.broadcast %160 : vector<1x1xf32> to vector<1x128xf32>
    %166 = arith.mulf %165, %92 : vector<1x128xf32>
    %167 = arith.addf %164, %166 : vector<1x128xf32>
    %168 = tpu.concatenate %91, %167 in 0 : vector<1x128xf32>, vector<1x128xf32> -> vector<2x128xf32>
    %c0_83 = arith.constant 0 : index
    %c0_84 = arith.constant 0 : index
    %169 = vector.load %arg13[%c0_83, %c0_84] : memref<128x128xf32, #tpu.memory_space<vmem>>, vector<128x128xf32>
    %cst_85 = arith.constant dense<0.000000e+00> : vector<2x128xf32>
    %170 = tpu.matmul %168, %169, %cst_85 {dimension_numbers = #tpu.dot_dimension_numbers<[1], [0], [0], [1], [0, 0, 1, 1], [], []>} : vector<2x128xf32>, vector<128x128xf32>, vector<2x128xf32> -> vector<2x128xf32>
    %c0_86 = arith.constant 0 : index
    %c0_87 = arith.constant 0 : index
    %171 = vector.load %arg14[%c0_86, %c0_87] : memref<1x128xf32, #tpu.memory_space<vmem>>, vector<1x128xf32>
    %172 = vector.broadcast %171 : vector<1x128xf32> to vector<2x128xf32>
    %173 = arith.addf %170, %172 : vector<2x128xf32>
    %cst_88 = arith.constant 0.000000e+00 : f32
    %174 = vector.broadcast %cst_88 : f32 to vector<2x128xf32>
    %175 = arith.maximumf %173, %174 : vector<2x128xf32>
    %176 = arith.addf %175, %3 : vector<2x128xf32>
    %177 = arith.mulf %176, %176 : vector<2x128xf32>
    %cst_89 = arith.constant dense<0.000000e+00> : vector<2xf32>
    %178 = vector.multi_reduction <add>, %177, %cst_89 [1] : vector<2x128xf32> to vector<2xf32>
    %179 = vector.shape_cast %178 : vector<2xf32> to vector<2x1xf32>
    %180 = math.sqrt %179 : vector<2x1xf32>
    %cst_90 = arith.constant 9.99999996E-13 : f32
    %181 = vector.broadcast %cst_90 : f32 to vector<2x1xf32>
    %182 = arith.maximumf %180, %181 : vector<2x1xf32>
    %183 = vector.broadcast %182 : vector<2x1xf32> to vector<2x128xf32>
    %184 = arith.divf %176, %183 : vector<2x128xf32>
    %c0_91 = arith.constant 0 : index
    %c0_92 = arith.constant 0 : index
    %185 = vector.load %arg15[%c0_91, %c0_92] : memref<128x16xf32, #tpu.memory_space<vmem>>, vector<128x16xf32>
    %cst_93 = arith.constant dense<0.000000e+00> : vector<2x16xf32>
    %186 = tpu.matmul %184, %185, %cst_93 {dimension_numbers = #tpu.dot_dimension_numbers<[1], [0], [0], [1], [0, 0, 1, 1], [], []>} : vector<2x128xf32>, vector<128x16xf32>, vector<2x16xf32> -> vector<2x16xf32>
    %c0_94 = arith.constant 0 : index
    %c0_95 = arith.constant 0 : index
    %187 = vector.load %arg16[%c0_94, %c0_95] : memref<2x16xf32, #tpu.memory_space<vmem>>, vector<2x16xf32>
    tpu.vector_store %arg16[%c0_94, %c0_95], %186 {strides = array<i32>} : memref<2x16xf32, #tpu.memory_space<vmem>>, vector<2x16xf32>,
    return
  }
}

</mosaic_0001>

<bundles_post_ra>
// kernel: tpu_custom_call.1
= control target key start
LH: loop header
LB: loop body
LE: loop exit
PB: predicated region body
PF: predicated region fallthrough
CT: control target
= control target key end

     0   :  { %s2960_s0 = inlined_call_operand.vmem [shape: f32[2,128,64], index: 0, kind: input, shape index: {}]   ;;  %s2961_s1 = inlined_call_operand.hbm [shape: f32[20,128], index: 1, kind: input, shape index: {}]   ;;  %s2962_s2 = inlined_call_operand.hbm [shape: f32[20,128], index: 2, kind: input, shape index: {}]   ;;  %s2963_s3 = inlined_call_operand.vmem [shape: f32[128,128], index: 3, kind: input, shape index: {}]   ;;  %s2964_s4 = inlined_call_operand.vmem [shape: f32[1,128], index: 4, kind: input, shape index: {}]   ;;  %s2965_s5 = inlined_call_operand.vmem [shape: f32[128,128], index: 5, kind: input, shape index: {}]   ;;  %s2966_s6 = inlined_call_operand.vmem [shape: f32[1,128], index: 6, kind: input, shape index: {}]   ;;  %s2967_s7 = inlined_call_operand.vmem [shape: f32[128,128], index: 7, kind: input, shape index: {}]   ;;  %s2968_s8 = inlined_call_operand.vmem [shape: f32[1,128], index: 8, kind: input, shape index: {}]   ;;  %s2969_s9 = inlined_call_operand.hbm [shape: f32[128,128], index: 9, kind: input, shape index: {}]   ;;  %s2970_s10 = inlined_call_operand.vmem [shape: f32[1,128], index: 10, kind: input, shape index: {}]   ;;  %s2971_s11 = inlined_call_operand.vmem [shape: f32[1,128], index: 11, kind: input, shape index: {}]   ;;  %s2972_s12 = inlined_call_operand.<no memory space> [shape: f32[1,1], index: 12, kind: input, shape index: {}]   ;;  %s2973_s13 = inlined_call_operand.hbm [shape: f32[128,128], index: 13, kind: input, shape index: {}]   ;;  %s2974_s14 = inlined_call_operand.vmem [shape: f32[1,128], index: 14, kind: input, shape index: {}]   ;;  %s2975_s15 = inlined_call_operand.vmem [shape: f32[128,16], index: 15, kind: input, shape index: {}]   ;;  %s2976_s16 = inlined_call_operand.hbm [shape: f32[2,16], index: 16, kind: output, shape index: {}]  }
   0x1   :  { %3025 = sst [smem:[#allocation39_spill]] %s2960_s0  ;;  %v21_v0 = vstv %s2972_s12 }
   0x2   :  { %22 = vst [vmem:[#allocation2] sm:$0x1] %v21_v0 }
   0x3   :  { %23 = vsyncpa [#allocation4], 0 }
   0x4   :  { %24 = vsyncpa [#allocation7], 0 }
   0x5   :  { %25 = vsyncpa [#allocation10], 0 }
   0x6   :  { %26 = vsyncpa [#allocation5], 0  ;;  %s46_s25 = sshll.u32 %s2962_s2, 4  ;;  %s1840_s26 = smov [#allocation6]   ;;  %s47_s25 = int_to_ptr.hbm [resolvable:$true] %s46_s25 }
   0x7   :  { %s48_s27 = sshll.u32 %s1840_s26, 4  ;;  %s33_s30 = sshll.u32 %s2961_s1, 4  ;;  %s49_s27 = int_to_ptr.vmem [resolvable:$true] %s48_s27  ;;  %s34_s30 = int_to_ptr.hbm [resolvable:$true] %s33_s30 }
   0x8   :  { %s1841_s0 = smov 128   ;;  %s1842_s17 = smov 8  }
   0x9   :  { %54 = dma.hbm_to_vmem [thread:$0]  %s47_s25, 384, %s49_s27, [#allocation7], %s1841_s0, %s1841_s0, %s1842_s17  }
   0xa   :  { %s1843_s12 = smov [#allocation3]   ;;  %s71_s21 = sshll.u32 %s2969_s9, 4  ;;  %s72_s21 = int_to_ptr.hbm [resolvable:$true] %s71_s21 }
   0xb   :  { %s35_s18 = sshll.u32 %s1843_s12, 4  ;;  %s90_s23 = sshll.u32 %s2973_s13, 4  ;;  %s36_s18 = int_to_ptr.vmem [resolvable:$true] %s35_s18  ;;  %s91_s23 = int_to_ptr.hbm [resolvable:$true] %s90_s23 }
   0xc   :  { %41 = dma.hbm_to_vmem [thread:$0]  %s34_s30, 384, %s36_s18, [#allocation4], %s1841_s0, %s1841_s0, %s1842_s17  }
   0xd   :  { %s1844_s24 = smov [#allocation8]   ;;  %s1845_s1 = smov [#allocation9]  }
   0xe   :  { %s73_s26 = sshll.u32 %s1844_s24, 4  ;;  %s92_s25 = sshll.u32 %s1845_s1, 4  ;;  %s74_s26 = int_to_ptr.vmem [resolvable:$true] %s73_s26  ;;  %s93_s25 = int_to_ptr.vmem [resolvable:$true] %s92_s25 }
   0xf   :  { %79 = dma.hbm_to_vmem [thread:$0]  %s72_s21, 2048, %s74_s26, [#allocation7], %s1841_s0, %s1841_s0, %s1842_s17  }
  0x10   :  { %98 = dma.hbm_to_vmem [thread:$0]  %s91_s23, 2048, %s93_s25, [#allocation10], %s1841_s0, %s1841_s0, %s1842_s17  }
  0x11   :  { %1832 = dma.done.wait [#allocation4], 384  }
  0x12   :  { %1833 = vsyncadd [#allocation4], 4294966912 }
  0x13   :  { %1834 = dma.done.wait [#allocation7], 2432  }
  0x14   :  { %1835 = vsyncadd [#allocation7], 4294964864 }
  0x15   :  { %1836 = dma.done.wait [#allocation10], 2048  }
  0x16   :  { %1837 = vsyncadd [#allocation10], 4294965248  ;;  %vm151_vm0 = vcmask 523264   ;;  %s3026_s28 = sld [smem:[#allocation39_spill]]  ;;  %vm356_vm2 = vcmask 130112   ;;  %vm360_vm3 = vcmask 195712  }
  0x17   :  { %vm364_vm4 = vcmask 261312   ;;  %vm368_vm5 = vcmask 326912   ;;  %vm372_vm6 = vcmask 392512   ;;  %vm376_vm7 = vcmask 458112  }
  0x18   :  { %vm380_vm8 = vcmask 523712   ;;  %vm384_vm9 = vcmask 589312   ;;  %vm388_vm10 = vcmask 654912   ;;  %vm392_vm11 = vcmask 720512  }
  0x19   :  { %vm2990_vm12 = vcmask 786112   ;;  %vm2982_vm13 = vcmask 851712   ;;  %vm2989_vm14 = vcmask 917312   ;;  %vm2988_vm15 = vcmask 982912  }
  0x1c   :  { %v135_v1 = vld [vmem:[%s3026_s28 + $0x80] sm:$0xff]  ;;  %v121_v3 = vld [vmem:[%s3026_s28 + $0x10] sm:$0xff]  ;;  %v136_v7 = vld [vmem:[%s3026_s28 + $0x88] sm:$0xff] }
  0x1d   :  { %v119_v2 = vld [vmem:[%s3026_s28] sm:$0xff]  ;;  %v200_v4 = vsel %vm151_vm0, %v135_v1, 0.0  ;;  %v158_v6 = vsel %vm151_vm0, %v121_v3, 0.0  ;;  %v120_v8 = vld [vmem:[%s3026_s28 + $0x8] sm:$0xff]  ;;  %v137_v9 = vld [vmem:[%s3026_s28 + $0x90] sm:$0xff]  ;;  %v203_v10 = vsel %vm151_vm0, %v136_v7, 0.0 }
  0x1e   :  { %v152_v5 = vsel %vm151_vm0, %v119_v2, 0.0  ;;  %201 = vadd.xlane.f32.xlu1 %v200_v4  ;;  %159 = vadd.xlane.f32.xlu2 %v158_v6  ;;  %v155_v11 = vsel %vm151_vm0, %v120_v8, 0.0  ;;  %v206_v12 = vsel %vm151_vm0, %v137_v9, 0.0  ;;  %v138_v13 = vld [vmem:[%s3026_s28 + $0x98] sm:$0xff]  ;;  %v123_v15 = vld [vmem:[%s3026_s28 + $0x20] sm:$0xff]  ;;  %v124_v19 = vld [vmem:[%s3026_s28 + $0x28] sm:$0xff] }
  0x1f   :  { %153 = vadd.xlane.f32.xlu0 %v152_v5  ;;  %v122_v14 = vld [vmem:[%s3026_s28 + $0x18] sm:$0xff]  ;;  %v209_v16 = vsel %vm151_vm0, %v138_v13, 0.0  ;;  %v164_v18 = vsel %vm151_vm0, %v123_v15, 0.0  ;;  %v139_v20 = vld [vmem:[%s3026_s28 + $0xa0] sm:$0xff]  ;;  %v140_v21 = vld [vmem:[%s3026_s28 + $0xa8] sm:$0xff]  ;;  %v167_v22 = vsel %vm151_vm0, %v124_v19, 0.0 }
  0x20   :  { %v161_v17 = vsel %vm151_vm0, %v122_v14, 0.0  ;;  %v212_v23 = vsel %vm151_vm0, %v139_v20, 0.0  ;;  %v215_v24 = vsel %vm151_vm0, %v140_v21, 0.0  ;;  %v141_v25 = vld [vmem:[%s3026_s28 + $0xb0] sm:$0xff]  ;;  %v126_v27 = vld [vmem:[%s3026_s28 + $0x38] sm:$0xff]  ;;  %v127_v31 = vld [vmem:[%s3026_s28 + $0x40] sm:$0xff] }
  0x21   :  { %v125_v26 = vld [vmem:[%s3026_s28 + $0x30] sm:$0xff]  ;;  %v218_v28 = vsel %vm151_vm0, %v141_v25, 0.0  ;;  %v173_v30 = vsel %vm151_vm0, %v126_v27, 0.0  ;;  %v142_v32 = vld [vmem:[%s3026_s28 + $0xb8] sm:$0xff]  ;;  %v143_v33 = vld [vmem:[%s3026_s28 + $0xc0] sm:$0xff]  ;;  %v176_v34 = vsel %vm151_vm0, %v127_v31, 0.0 }
  0x22   :  { %v170_v29 = vsel %vm151_vm0, %v125_v26, 0.0  ;;  %v221_v35 = vsel %vm151_vm0, %v142_v32, 0.0  ;;  %v224_v36 = vsel %vm151_vm0, %v143_v33, 0.0  ;;  %v144_v37 = vld [vmem:[%s3026_s28 + $0xc8] sm:$0xff]  ;;  %v129_v39 = vld [vmem:[%s3026_s28 + $0x50] sm:$0xff]  ;;  %v130_v43 = vld [vmem:[%s3026_s28 + $0x58] sm:$0xff]  ;;  %v351_v26 = vlaneseq }
  0x23   :  { %v128_v38 = vld [vmem:[%s3026_s28 + $0x48] sm:$0xff]  ;;  %v227_v40 = vsel %vm151_vm0, %v144_v37, 0.0  ;;  %v182_v42 = vsel %vm151_vm0, %v129_v39, 0.0  ;;  %v145_v44 = vld [vmem:[%s3026_s28 + $0xd0] sm:$0xff]  ;;  %v146_v45 = vld [vmem:[%s3026_s28 + $0xd8] sm:$0xff]  ;;  %v185_v46 = vsel %vm151_vm0, %v130_v43, 0.0 }
  0x24   :  { %v179_v41 = vsel %vm151_vm0, %v128_v38, 0.0  ;;  %v230_v47 = vsel %vm151_vm0, %v145_v44, 0.0  ;;  %v233_v48 = vsel %vm151_vm0, %v146_v45, 0.0  ;;  %v147_v49 = vld [vmem:[%s3026_s28 + $0xe0] sm:$0xff]  ;;  %v132_v51 = vld [vmem:[%s3026_s28 + $0x68] sm:$0xff]  ;;  %v133_v55 = vld [vmem:[%s3026_s28 + $0x70] sm:$0xff] }
  0x25   :  { %v131_v50 = vld [vmem:[%s3026_s28 + $0x60] sm:$0xff]  ;;  %v236_v52 = vsel %vm151_vm0, %v147_v49, 0.0  ;;  %v191_v54 = vsel %vm151_vm0, %v132_v51, 0.0  ;;  %v148_v56 = vld [vmem:[%s3026_s28 + $0xe8] sm:$0xff]  ;;  %v149_v57 = vld [vmem:[%s3026_s28 + $0xf0] sm:$0xff]  ;;  %v194_v58 = vsel %vm151_vm0, %v133_v55, 0.0 }
  0x26   :  { %204 = vadd.xlane.f32.xlu1 %v203_v10  ;;  %207 = vadd.xlane.f32.xlu2 %v206_v12  ;;  %v188_v53 = vsel %vm151_vm0, %v131_v50, 0.0  ;;  %v239_v59 = vsel %vm151_vm0, %v148_v56, 0.0  ;;  %v242_v60 = vsel %vm151_vm0, %v149_v57, 0.0  ;;  %v150_v61 = vld [vmem:[%s3026_s28 + $0xf8] sm:$0xff]  ;;  %v1846_v10 = vmov 64.0  }
  0x27   :  { %156 = vadd.xlane.f32.xlu0 %v155_v11  ;;  %v134_v62 = vld [vmem:[%s3026_s28 + $0x78] sm:$0xff]  ;;  %v245_v63 = vsel %vm151_vm0, %v150_v61, 0.0  ;;  %1680 = vrcp.f32 %v1846_v10  ;;  %v2097_v31 = vand.u32 127, %v351_v26  ;;  %s1649_s28 = sshll.u32 %s2976_s16, 4  ;;  %s1650_s28 = int_to_ptr.hbm [resolvable:$true] %s1649_s28 }
  0x28   :  { %v197_v0 = vsel %vm151_vm0, %v134_v62, 0.0  ;;  %vm2983_vm0 = vcmask 1048512  }
  0x29   :  { %v2126_v43 = vadd.s32 4294967280, %v2097_v31  ;;  %v2154_v56 = vadd.s32 4294967264, %v2097_v31  ;;  %v2157_v57 = vadd.s32 4294967256, %v2097_v31  ;;  %v2185_v10 = vadd.s32 4294967248, %v2097_v31 }
  0x2d   :  { %v1681_v11 = vpop.eup %1680 }
  0x2e   :  { %210 = vadd.xlane.f32.xlu1 %v209_v16  ;;  %165 = vadd.xlane.f32.xlu2 %v164_v18  ;;  %v249_v15 = vmul.f32 64.0, %v1681_v11  ;;  %vm253_vm1 = vweird.f32 %v1681_v11 }
  0x2f   :  { %162 = vadd.xlane.f32.xlu0 %v161_v17 }
  0x30   :  { %v250_v16 = vsub.f32 1.0, %v249_v15  ;;  %v2195_v15 = vadd.s32 4294967232, %v2097_v31 }
  0x32   :  { %v251_v20 = vmul.f32 %v1681_v11, %v250_v16 }
  0x34   :  { %v252_v21 = vadd.f32 %v1681_v11, %v251_v20 }
  0x36   :  { %168 = vadd.xlane.f32.xlu1 %v167_v22  ;;  %216 = vadd.xlane.f32.xlu2 %v215_v24  ;;  %v2083_v25 = vsel %vm253_vm1, %v1681_v11, %v252_v21  ;;  %vm2985_vm1 = vcmask 1041408  }
  0x37   :  { %213 = vadd.xlane.f32.xlu0 %v212_v23 }
  0x3e   :  { %219 = vadd.xlane.f32.xlu1 %v218_v28  ;;  %174 = vadd.xlane.f32.xlu2 %v173_v30 }
  0x3f   :  { %171 = vadd.xlane.f32.xlu0 %v170_v29 }
  0x46   :  { %177 = vadd.xlane.f32.xlu1 %v176_v34  ;;  %225 = vadd.xlane.f32.xlu2 %v224_v36 }
  0x47   :  { %222 = vadd.xlane.f32.xlu0 %v221_v35 }
  0x4e   :  { %228 = vadd.xlane.f32.xlu1 %v227_v40  ;;  %183 = vadd.xlane.f32.xlu2 %v182_v42  ;;  %v2123_v42 = vadd.s32 4294967288, %v2097_v31 }
  0x4f   :  { %180 = vadd.xlane.f32.xlu0 %v179_v41 }
  0x56   :  { %186 = vadd.xlane.f32.xlu1 %v185_v46  ;;  %234 = vadd.xlane.f32.xlu2 %v233_v48  ;;  %v2135_v48 = vadd.s32 4294967272, %v2097_v31 }
  0x57   :  { %231 = vadd.xlane.f32.xlu0 %v230_v47 }
  0x5e   :  { %237 = vadd.xlane.f32.xlu1 %v236_v52  ;;  %192 = vadd.xlane.f32.xlu2 %v191_v54 }
  0x5f   :  { %189 = vadd.xlane.f32.xlu0 %v188_v53 }
  0x66   :  { %195 = vadd.xlane.f32.xlu1 %v194_v58  ;;  %243 = vadd.xlane.f32.xlu2 %v242_v60 }
  0x67   :  { %240 = vadd.xlane.f32.xlu0 %v239_v59 }
  0x6e   :  { %246 = vadd.xlane.f32.xlu1 %v245_v63 }
  0x6f   :  { %198 = vadd.xlane.f32.xlu0 %v197_v0 }
  0x91   :  { %v202_v1 = vpop.xlane.xlu1 %201  ;;  %v160_v3 = vpop.xlane.xlu2 %159 }
  0x92   :  { %v154_v2 = vpop.xlane.xlu0 %153  ;;  %v2092_v29 = vmul.f32 %v2083_v25, %v202_v1  ;;  %v2100_v32 = vmul.f32 %v2083_v25, %v160_v3 }
  0x93   :  { %v2095_v30 = vmul.f32 %v2083_v25, %v154_v2 }
  0x94   :  { %v303_v40 = vmul.f32 %v2092_v29, %v2092_v29  ;;  %v289_v44 = vmul.f32 %v2100_v32, %v2100_v32 }
  0x95   :  { %v287_v41 = vmul.f32 %v2095_v30, %v2095_v30 }
  0x96   :  { %v414_v52 = vperm.slane %v303_v40, %v2097_v31  ;;  %v359_v59 = vperm.slane %v289_v44, %v2126_v43  ;;  %v2222_v44 = vadd.s32 4294967224, %v2097_v31 }
  0x97   :  { %v353_v53 = vperm.slane %v287_v41, %v2097_v31 }
  0x99   :  { %v205_v4 = vpop.xlane.xlu1 %204  ;;  %v208_v6 = vpop.xlane.xlu2 %207 }
  0x9a   :  { %v157_v5 = vpop.xlane.xlu0 %156  ;;  %v2086_v27 = vmul.f32 %v2083_v25, %v205_v4  ;;  %v2107_v35 = vmul.f32 %v2083_v25, %v208_v6 }
  0x9b   :  { %v2089_v28 = vmul.f32 %v2083_v25, %v157_v5 }
  0x9c   :  { %v304_v33 = vmul.f32 %v2086_v27, %v2086_v27  ;;  %v305_v47 = vmul.f32 %v2107_v35, %v2107_v35 }
  0x9d   :  { %v288_v34 = vmul.f32 %v2089_v28, %v2089_v28 }
  0x9e   :  { %v415_v45 = vperm.slane %v304_v33, %v2123_v42  ;;  %v417_v62 = vperm.slane %v305_v47, %v2126_v43 }
  0x9f   :  { %v355_v46 = vperm.slane %v288_v34, %v2123_v42 }
  0xa0   :  { %v416_v60 = vsel %vm356_vm2, %v415_v45, %v414_v52 }
  0xa1   :  { %v211_v7 = vpop.xlane.xlu1 %210  ;;  %v166_v9 = vpop.xlane.xlu2 %165  ;;  %v357_v61 = vsel %vm356_vm2, %v355_v46, %v353_v53 }
  0xa2   :  { %v163_v8 = vpop.xlane.xlu0 %162  ;;  %v2138_v49 = vmul.f32 %v2083_v25, %v211_v7  ;;  %v2143_v51 = vmul.f32 %v2083_v25, %v166_v9 }
  0xa3   :  { %v2114_v38 = vmul.f32 %v2083_v25, %v163_v8 }
  0xa4   :  { %v306_v1 = vmul.f32 %v2138_v49, %v2138_v49  ;;  %v291_v3 = vmul.f32 %v2143_v51, %v2143_v51 }
  0xa5   :  { %v290_v50 = vmul.f32 %v2114_v38, %v2114_v38 }
  0xa7   :  { %v363_v2 = vperm.slane %v290_v50, %v2135_v48 }
  0xa9   :  { %v169_v12 = vpop.xlane.xlu1 %168  ;;  %v217_v14 = vpop.xlane.xlu2 %216 }
  0xaa   :  { %v214_v13 = vpop.xlane.xlu0 %213  ;;  %v2148_v54 = vmul.f32 %v2083_v25, %v169_v12  ;;  %v2172_v4 = vmul.f32 %v2083_v25, %v217_v14  ;;  %v2190_v12 = vadd.s32 4294967240, %v2097_v31  ;;  %v361_v14 = vsel %vm360_vm3, %v359_v59, %v357_v61 }
  0xab   :  { %v2151_v55 = vmul.f32 %v2083_v25, %v214_v13  ;;  %v418_v13 = vsel %vm360_vm3, %v417_v62, %v416_v60 }
  0xac   :  { %3027 = vst [vmem:[#allocation16_spill] sm:$0xff] %v2172_v4  ;;  %v292_v6 = vmul.f32 %v2148_v54, %v2148_v54  ;;  %v308_v20 = vmul.f32 %v2172_v4, %v2172_v4 }
  0xad   :  { %v307_v7 = vmul.f32 %v2151_v55, %v2151_v55 }
  0xae   :  { %v371_v21 = vperm.slane %v292_v6, %v2157_v57  ;;  %v423_v59 = vperm.slane %v308_v20, %v2157_v57  ;;  %v2272_v20 = vadd.s32 4294967208, %v2097_v31 }
  0xaf   :  { %v421_v26 = vperm.slane %v307_v7, %v2154_v56 }
  0xb0   :  { %3039 = vst [vmem:[#allocation28_spill] sm:$0xff] %v2272_v20 }
  0xb1   :  { %v220_v17 = vpop.xlane.xlu1 %219  ;;  %v175_v19 = vpop.xlane.xlu2 %174 }
  0xb2   :  { %v172_v18 = vpop.xlane.xlu0 %171  ;;  %v2179_v8 = vmul.f32 %v2083_v25, %v220_v17  ;;  %v2182_v9 = vmul.f32 %v2083_v25, %v175_v19  ;;  %v419_v17 = vperm.slane %v306_v1, %v2135_v48  ;;  %v367_v19 = vperm.slane %v291_v3, %v2154_v56 }
  0xb3   :  { %v2160_v58 = vmul.f32 %v2083_v25, %v172_v18  ;;  %v365_v18 = vsel %vm364_vm4, %v363_v2, %v361_v14 }
  0xb4   :  { %3028 = vst [vmem:[#allocation17_spill] sm:$0xff] %v2179_v8  ;;  %v309_v33 = vmul.f32 %v2179_v8, %v2179_v8  ;;  %v420_v52 = vsel %vm364_vm4, %v419_v17, %v418_v13  ;;  %v369_v53 = vsel %vm368_vm5, %v367_v19, %v365_v18 }
  0xb5   :  { %3029 = vst [vmem:[#allocation18_spill] sm:$0xff] %v2182_v9  ;;  %v293_v11 = vmul.f32 %v2160_v58, %v2160_v58  ;;  %v373_v61 = vsel %vm372_vm6, %v371_v21, %v369_v53 }
  0xb6   :  { %v425_v62 = vperm.slane %v309_v33, %v2185_v10 }
  0xb7   :  { %v375_v34 = vperm.slane %v293_v11, %v2185_v10 }
  0xb9   :  { %v2077_v22 = vpop.xlane.xlu1 %177  ;;  %v2081_v24 = vpop.xlane.xlu2 %225  ;;  %v377_v2 = vsel %vm376_vm7, %v375_v34, %v373_v61 }
  0xba   :  { %v2079_v23 = vpop.xlane.xlu0 %222  ;;  %v2215_v40 = vmul.f32 %v2083_v25, %v2077_v22  ;;  %v2219_v41 = vmul.f32 %v2083_v25, %v2081_v24  ;;  %v2235_v22 = vadd.s32 4294967216, %v2097_v31 }
  0xbb   :  { %v2199_v16 = vmul.f32 %v2083_v25, %v2079_v23  ;;  %v294_v23 = vmul.f32 %v2182_v9, %v2182_v9 }
  0xbc   :  { %3031 = vst [vmem:[#allocation20_spill] sm:$0xff] %v2215_v40  ;;  %v295_v3 = vmul.f32 %v2215_v40, %v2215_v40  ;;  %v311_v6 = vmul.f32 %v2219_v41, %v2219_v41 }
  0xbd   :  { %3030 = vst [vmem:[#allocation19_spill] sm:$0xff] %v2199_v16  ;;  %v310_v45 = vmul.f32 %v2199_v16, %v2199_v16  ;;  %v379_v1 = vperm.slane %v294_v23, %v2190_v12 }
  0xbe   :  { %3032 = vst [vmem:[#allocation21_spill] sm:$0xff] %v2219_v41  ;;  %v383_v33 = vperm.slane %v295_v3, %v2195_v15  ;;  %v429_v23 = vperm.slane %v311_v6, %v2195_v15 }
  0xbf   :  { %v427_v7 = vperm.slane %v310_v45, %v2190_v12 }
  0xc1   :  { %v2109_v36 = vpop.xlane.xlu1 %228  ;;  %v2116_v39 = vpop.xlane.xlu2 %183 }
  0xc2   :  { %v2111_v37 = vpop.xlane.xlu0 %180  ;;  %v2228_v46 = vmul.f32 %v2083_v25, %v2109_v36 }
  0xc3   :  { %v2232_v47 = vmul.f32 %v2083_v25, %v2111_v37  ;;  %v422_v37 = vsel %vm368_vm5, %v421_v26, %v420_v52  ;;  %v381_v26 = vsel %vm380_vm8, %v379_v1, %v377_v2 }
  0xc4   :  { %3033 = vst [vmem:[#allocation22_spill] sm:$0xff] %v2228_v46  ;;  %v312_v11 = vmul.f32 %v2228_v46, %v2228_v46  ;;  %v424_v17 = vsel %vm372_vm6, %v423_v59, %v422_v37 }
  0xc5   :  { %3034 = vst [vmem:[#allocation23_spill] sm:$0xff] %v2232_v47  ;;  %v296_v13 = vmul.f32 %v2232_v47, %v2232_v47  ;;  %v426_v19 = vsel %vm376_vm7, %v425_v62, %v424_v17 }
  0xc6   :  { %v428_v34 = vsel %vm380_vm8, %v427_v7, %v426_v19  ;;  %v431_v45 = vperm.slane %v312_v11, %v2222_v44  ;;  %v385_v11 = vsel %vm384_vm9, %v383_v33, %v381_v26  ;;  %v2322_v26 = vadd.s32 4294967192, %v2097_v31 }
  0xc7   :  { %v387_v52 = vperm.slane %v296_v13, %v2222_v44 }
  0xc9   :  { %v187_v63 = vpop.xlane.xlu1 %186  ;;  %v235_v5 = vpop.xlane.xlu2 %234  ;;  %v389_v19 = vsel %vm388_vm10, %v387_v52, %v385_v11  ;;  %v2336_v11 = vadd.s32 4294967184, %v2097_v31 }
  0xca   :  { %v232_v0 = vpop.xlane.xlu0 %231  ;;  %v2262_v14 = vmul.f32 %v2083_v25, %v187_v63 }
  0xcb   :  { %v2241_v60 = vmul.f32 %v2083_v25, %v232_v0  ;;  %v2254_v0 = vmul.f32 %v2083_v25, %v2116_v39  ;;  %v2268_v39 = vmul.f32 %v2083_v25, %v235_v5 }
  0xcc   :  { %3037 = vst [vmem:[#allocation26_spill] sm:$0xff] %v2262_v14 }
  0xcd   :  { %3035 = vst [vmem:[#allocation24_spill] sm:$0xff] %v2241_v60  ;;  %v313_v18 = vmul.f32 %v2241_v60, %v2241_v60  ;;  %v297_v5 = vmul.f32 %v2254_v0, %v2254_v0  ;;  %v314_v61 = vmul.f32 %v2268_v39, %v2268_v39 }
  0xce   :  { %3036 = vst [vmem:[#allocation25_spill] sm:$0xff] %v2254_v0 }
  0xcf   :  { %3038 = vst [vmem:[#allocation27_spill] sm:$0xff] %v2268_v39  ;;  %v433_v59 = vperm.slane %v313_v18, %v2235_v22  ;;  %v391_v13 = vperm.slane %v297_v5, %v2235_v22 }
  0xd1   :  { %v238_v50 = vpop.xlane.xlu1 %237  ;;  %v193_v36 = vpop.xlane.xlu2 %192 }
  0xd2   :  { %v190_v24 = vpop.xlane.xlu0 %189  ;;  %v2275_v21 = vmul.f32 %v2083_v25, %v238_v50  ;;  %v298_v50 = vmul.f32 %v2262_v14, %v2262_v14  ;;  %v2294_v37 = vmul.f32 %v2083_v25, %v193_v36  ;;  %v430_v36 = vsel %vm384_vm9, %v429_v23, %v428_v34 }
  0xd3   :  { %v2278_v63 = vmul.f32 %v2083_v25, %v190_v24  ;;  %v432_v18 = vsel %vm388_vm10, %v431_v45, %v430_v36 }
  0xd4   :  { %3040 = vst [vmem:[#allocation29_spill] sm:$0xff] %v2275_v21  ;;  %v315_v2 = vmul.f32 %v2275_v21, %v2275_v21  ;;  %v300_v33 = vmul.f32 %v2294_v37, %v2294_v37  ;;  %v434_v23 = vsel %vm392_vm11, %v433_v59, %v432_v18 }
  0xd5   :  { %3041 = vst [vmem:[#allocation30_spill] sm:$0xff] %v2278_v63  ;;  %v299_v3 = vmul.f32 %v2278_v63, %v2278_v63 }
  0xd6   :  { %3042 = vst [vmem:[#allocation31_spill] sm:$0xff] %v2294_v37 }
  0xd9   :  { %v196_v24 = vpop.xlane.xlu1 %195  ;;  %v244_v1 = vpop.xlane.xlu2 %243 }
  0xda   :  { %v241_v53 = vpop.xlane.xlu0 %240  ;;  %v2304_v6 = vmul.f32 %v2083_v25, %v196_v24  ;;  %v2307_v7 = vmul.f32 %v2083_v25, %v244_v1  ;;  %v2318_v24 = vadd.s32 4294967200, %v2097_v31  ;;  %v435_v1 = vperm.slane %v314_v61, %v2272_v20 }
  0xdb   :  { %v2297_v62 = vmul.f32 %v2083_v25, %v241_v53  ;;  %v395_v53 = vperm.slane %v298_v50, %v2272_v20  ;;  %v393_v61 = vsel %vm392_vm11, %v391_v13, %v389_v19 }
  0xdc   :  { %3044 = vst [vmem:[#allocation33_spill] sm:$0xff] %v2304_v6  ;;  %v437_v5 = vperm.slane %v315_v2, %v2318_v24  ;;  %v399_v34 = vperm.slane %v299_v3, %v2318_v24  ;;  %v301_v45 = vmul.f32 %v2304_v6, %v2304_v6  ;;  %v317_v52 = vmul.f32 %v2307_v7, %v2307_v7 }
  0xdd   :  { %3043 = vst [vmem:[#allocation32_spill] sm:$0xff] %v2297_v62  ;;  %v316_v17 = vmul.f32 %v2297_v62, %v2297_v62  ;;  %v397_v2 = vsel %vm2990_vm12, %v395_v53, %v393_v61  ;;  %v403_v3 = vperm.slane %v300_v33, %v2322_v26  ;;  %v2352_v61 = vadd.s32 4294967176, %v2097_v31 }
  0xde   :  { %3045 = vst [vmem:[#allocation34_spill] sm:$0xff] %v2307_v7  ;;  %v401_v13 = vsel %vm2982_vm13, %v399_v34, %v397_v2  ;;  %v407_v19 = vperm.slane %v301_v45, %v2336_v11  ;;  %v441_v53 = vperm.slane %v317_v52, %v2336_v11 }
  0xdf   :  { %3046 = vst [vmem:[#allocation35_spill] sm:$0xff] %v2318_v24  ;;  %v439_v50 = vperm.slane %v316_v17, %v2322_v26  ;;  %v436_v17 = vsel %vm2990_vm12, %v435_v1, %v434_v23  ;;  %v405_v1 = vsel %vm2989_vm14, %v403_v3, %v401_v13 }
  0xe0   :  { %v438_v20 = vsel %vm2982_vm13, %v437_v5, %v436_v17  ;;  %3049 = vst [vmem:[#allocation38_spill] sm:$0xff] %v2352_v61  ;;  %v409_v34 = vsel %vm2988_vm15, %v407_v19, %v405_v1  ;;  %vm2984_vm13 = vcmask 1041409  }
  0xe1   :  { %v247_v36 = vpop.xlane.xlu1 %246 }
  0xe2   :  { %v199_v59 = vpop.xlane.xlu0 %198  ;;  %v2341_v18 = vmul.f32 %v2083_v25, %v247_v36  ;;  %v440_v36 = vsel %vm2989_vm14, %v439_v50, %v438_v20 }
  0xe3   :  { %v2344_v24 = vmul.f32 %v2083_v25, %v199_v59  ;;  %v442_v45 = vsel %vm2988_vm15, %v441_v53, %v440_v36 }
  0xe4   :  { %3047 = vst [vmem:[#allocation36_spill] sm:$0xff] %v2341_v18  ;;  %v318_v33 = vmul.f32 %v2341_v18, %v2341_v18 }
  0xe5   :  { %3048 = vst [vmem:[#allocation37_spill] sm:$0xff] %v2344_v24  ;;  %v302_v25 = vmul.f32 %v2344_v24, %v2344_v24 }
  0xe6   :  { %v443_v5 = vperm.slane %v318_v33, %v2352_v61  ;;  %v1847_v33 = vmov 0  }
  0xe7   :  { %v411_v23 = vperm.slane %v302_v25, %v2352_v61  ;;  %1672 = vset.pattern.permute.xlu2 %v1847_v33  ;;  %1671 = vset.pattern.permute.xlu1 %v1847_v33 }
  0xe8   :  { %v444_v59 = vsel %vm2983_vm0, %v443_v5, %v442_v45  ;;  %1670 = vset.pattern.permute.xlu0 %v1847_v33 }
  0xe9   :  { %v413_v52 = vsel %vm2983_vm0, %v411_v23, %v409_v34 }
  0xea   :  { %v446_v20 = vsel %vm2984_vm13, %v444_v59, %v413_v52 }
  0xeb   :  { %v449_v50 = vsel %vm2985_vm1, %v446_v20, 0.0 }
  0xec   :  { %450 = vadd.xlane.f32.xlu2 %v449_v50 }
 0x15f   :  { %v451_v2 = vpop.xlane.xlu2 %450 }
 0x160   :  { %1682 = vrsqrt.f32 %v451_v2  ;;  %vm459_vm0 = vcmp.eq.f32.partialorder %v451_v2, inf  ;;  %v462_v1 = vand.u32 2147483648, %v451_v2  ;;  %vm461_vm13 = vcmp.eq.f32.partialorder %v451_v2, 0.0 }
 0x166   :  { %v1683_v3 = vpop.eup %1682 }
 0x167   :  { %v453_v17 = vmul.f32 %v1683_v3, %v451_v2 }
 0x169   :  { %v454_v13 = vmul.f32 %v1683_v3, %v453_v17 }
 0x16b   :  { %v455_v19 = vmul.f32 0.5, %v454_v13 }
 0x16d   :  { %v456_v53 = vsub.f32 1.5, %v455_v19 }
 0x16f   :  { %v457_v25 = vmul.f32 %v1683_v3, %v456_v53 }
 0x171   :  { %v458_v36 = vmul.f32 %v457_v25, %v451_v2 }
 0x173   :  { %v460_v23 = vsel %vm459_vm0, %v451_v2, %v458_v36  ;;  %vm3052_vm0 = vcmask 786112  }
 0x174   :  { %v463_v5 = vsel %vm461_vm13, %v462_v1, %v460_v23 }
 0x175   :  { %v464_v34 = vmax.f32 %v463_v5, 1e-12 }
 0x177   :  { %v466_v45 = vperm.slane %v464_v34, 0  ;;  %v467_v19 = vperm.slane %v464_v34, 1 }
 0x179   :  { %1684 = vrcp.f32 %v466_v45  ;;  %v481_v50 = vand.u32 2147483648, %v466_v45  ;;  %v479_v13 = vand.u32 2147483647, %v466_v45  ;;  %vm475_vm15 = vweird.f32 %v466_v45 }
 0x17a   :  { %1686 = vrcp.f32 %v467_v19  ;;  %vm505_vm13 = vweird.f32 %v467_v19 }
 0x17b   :  { %v482_v3 = vor.u32 1.1754944e-38, %v481_v50  ;;  %vm480_vm12 = vcmp.eq.f32.partialorder %v479_v13, 8.507059e+37  ;;  %v511_v13 = vand.u32 2147483648, %v467_v19 }
 0x17f   :  { %v1685_v52 = vpop.eup %1684 }
 0x180   :  { %v471_v59 = vmul.f32 %v1685_v52, %v466_v45  ;;  %vm476_vm1 = vweird.f32 %v1685_v52  ;;  %v1687_v1 = vpop.eup %1686 }
 0x181   :  { %vm477_vm14 = vmor %vm475_vm15, %vm476_vm1  ;;  %vm3053_vm1 = vcmask 851712  }
 0x182   :  { %v472_v20 = vsub.f32 1.0, %v471_v59 }
 0x184   :  { %v473_v17 = vmul.f32 %v1685_v52, %v472_v20 }
 0x186   :  { %v474_v61 = vadd.f32 %v1685_v52, %v473_v17 }
 0x188   :  { %v478_v33 = vsel %vm477_vm14, %v1685_v52, %v474_v61  ;;  %v501_v61 = vmul.f32 %v1687_v1, %v467_v19 }
 0x189   :  { %v483_v53 = vsel %vm480_vm12, %v482_v3, %v478_v33  ;;  %vm506_vm12 = vweird.f32 %v1687_v1 }
 0x18a   :  { %v486_v2 = vmul.f32 %v483_v53, %v2100_v32  ;;  %v485_v25 = vmul.f32 %v483_v53, %v2089_v28  ;;  %v484_v36 = vmul.f32 %v483_v53, %v2095_v30  ;;  %v487_v23 = vmul.f32 %v483_v53, %v2114_v38  ;;  %vm507_vm14 = vmor %vm505_vm13, %vm506_vm12 }
 0x18b   :  { %v488_v5 = vmul.f32 %v483_v53, %v2143_v51  ;;  %v491_v34 = vmul.f32 %v483_v53, %v2182_v9  ;;  %v502_v45 = vsub.f32 1.0, %v501_v61  ;;  %v489_v52 = vmul.f32 %v483_v53, %v2148_v54 }
 0x18c   :  { %561 = vperm.xlu2 %1672, %v486_v2   ;;  %558 = vperm.xlu1 %1671, %v485_v25   ;;  %v490_v59 = vmul.f32 %v483_v53, %v2160_v58  ;;  %v494_v20 = vmul.f32 %v483_v53, %v2254_v0  ;;  %v492_v3 = vmul.f32 %v483_v53, %v2215_v40  ;;  %v509_v2 = vand.u32 2147483647, %v467_v19 }
 0x18d   :  { %555 = vperm.xlu0 %1670, %v484_v36   ;;  %v503_v50 = vmul.f32 %v1687_v1, %v502_v45  ;;  %v493_v33 = vmul.f32 %v483_v53, %v2232_v47  ;;  %v497_v25 = vmul.f32 %v483_v53, %v2294_v37  ;;  %v496_v61 = vmul.f32 %v483_v53, %v2278_v63 }
 0x18e   :  { %vm510_vm15 = vcmp.eq.f32.partialorder %v509_v2, 8.507059e+37  ;;  %v498_v19 = vmul.f32 %v483_v53, %v2304_v6  ;;  %vm3054_vm12 = vcmask 917312   ;;  %vm3056_vm13 = vcmask 982912  }
 0x18f   :  { %v504_v17 = vadd.f32 %v1687_v1, %v503_v50 }
 0x191   :  { %v508_v36 = vsel %vm507_vm14, %v1687_v1, %v504_v17  ;;  %vm3057_vm14 = vcmask 1048512  }
 0x194   :  { %564 = vperm.xlu2 %1672, %v487_v23   ;;  %567 = vperm.xlu1 %1671, %v488_v5   ;;  %v512_v23 = vor.u32 1.1754944e-38, %v511_v13 }
 0x195   :  { %576 = vperm.xlu0 %1670, %v491_v34   ;;  %v495_v34 = vmul.f32 %v483_v53, %v2262_v14 }
 0x196   :  { %v513_v5 = vsel %vm510_vm15, %v512_v23, %v508_v36  ;;  %vm3058_vm15 = vmmov %vm3052_vm0 }
 0x197   :  { %v514_v45 = vmul.f32 %v513_v5, %v2092_v29  ;;  %v515_v1 = vmul.f32 %v513_v5, %v2086_v27  ;;  %v520_v50 = vmul.f32 %v513_v5, %v2179_v8  ;;  %v518_v17 = vmul.f32 %v513_v5, %v2151_v55 }
 0x198   :  { %v519_v13 = vmul.f32 %v513_v5, %v2172_v4  ;;  %v526_v2 = vmul.f32 %v513_v5, %v2275_v21  ;;  %v525_v36 = vmul.f32 %v513_v5, %v2268_v39  ;;  %v529_v23 = vmul.f32 %v513_v5, %v2341_v18  ;;  %v2441_v18 = vld [vmem:[%s2963_s3 + $0x18] sm:$0xff] }
 0x19c   :  { %570 = vperm.xlu2 %1672, %v489_v52   ;;  %573 = vperm.xlu1 %1671, %v490_v59   ;;  %v499_v52 = vmul.f32 %v483_v53, %v2344_v24  ;;  %v517_v59 = vmul.f32 %v513_v5, %v2138_v49  ;;  %v523_v53 = vmul.f32 %v513_v5, %v2228_v46 }
 0x19d   :  { %585 = vperm.xlu0 %1670, %v494_v20   ;;  %v516_v20 = vmul.f32 %v513_v5, %v2107_v35 }
 0x1a4   :  { %579 = vperm.xlu2 %1672, %v492_v3   ;;  %582 = vperm.xlu1 %1671, %v493_v33   ;;  %v521_v3 = vmul.f32 %v513_v5, %v2199_v16  ;;  %v522_v33 = vmul.f32 %v513_v5, %v2219_v41 }
 0x1a5   :  { %594 = vperm.xlu0 %1670, %v497_v25   ;;  %v524_v25 = vmul.f32 %v513_v5, %v2241_v60  ;;  %v650_v60 = vld [vmem:[%s2963_s3] sm:$0xff] }
 0x1ac   :  { %588 = vperm.xlu2 %1672, %v495_v34   ;;  %591 = vperm.xlu1 %1671, %v496_v61   ;;  %v527_v34 = vmul.f32 %v513_v5, %v2297_v62  ;;  %v528_v61 = vmul.f32 %v513_v5, %v2307_v7  ;;  %v662_v5 = vld [vmem:[%s2963_s3 + $0x60] sm:$0xff]  ;;  %v652_v7 = vld [vmem:[%s2963_s3 + $0x10] sm:$0xff] }
 0x1ad   :  { %1048 = vperm.xlu0 %1670, %v514_v45  }
 0x1b4   :  { %597 = vperm.xlu2 %1672, %v498_v19   ;;  %600 = vperm.xlu1 %1671, %v499_v52   ;;  %v665_v19 = vld [vmem:[%s2963_s3 + $0x78] sm:$0xff] }
 0x1b5   :  { %1057 = vperm.xlu0 %1670, %v517_v59   ;;  %670 = vmatpush.msra.mxu0 %v665_v19  ;;  %v664_v59 = vld [vmem:[%s2963_s3 + $0x70] sm:$0xff] }
 0x1b7   :  { %671 = vmatpush.msra.mxu0 %v664_v59 }
 0x1bc   :  { %1051 = vperm.xlu2 %1672, %v515_v1   ;;  %1054 = vperm.xlu1 %1671, %v516_v20   ;;  %v663_v1 = vld [vmem:[%s2963_s3 + $0x68] sm:$0xff]  ;;  %v661_v20 = vld [vmem:[%s2963_s3 + $0x58] sm:$0xff] }
 0x1bd   :  { %1066 = vperm.xlu0 %1670, %v520_v50   ;;  %672 = vmatpush.msra.mxu0 %v663_v1  ;;  %v660_v50 = vld [vmem:[%s2963_s3 + $0x50] sm:$0xff] }
 0x1bf   :  { %673 = vmatpush.msra.mxu0 %v662_v5 }
 0x1c1   :  { %674 = vmatpush.msra.mxu0 %v661_v20 }
 0x1c3   :  { %675 = vmatpush.msra.mxu0 %v660_v50 }
 0x1c4   :  { %1060 = vperm.xlu2 %1672, %v518_v17   ;;  %1063 = vperm.xlu1 %1671, %v519_v13   ;;  %v659_v17 = vld [vmem:[%s2963_s3 + $0x48] sm:$0xff] }
 0x1c5   :  { %1075 = vperm.xlu0 %1670, %v523_v53   ;;  %v658_v53 = vld [vmem:[%s2963_s3 + $0x40] sm:$0xff]  ;;  %676 = vmatpush.msra.mxu0 %v659_v17 }
 0x1c7   :  { %677 = vmatpush.msra.mxu0 %v658_v53 }
 0x1cc   :  { %1069 = vperm.xlu2 %1672, %v521_v3   ;;  %1072 = vperm.xlu1 %1671, %v522_v33   ;;  %v657_v33 = vld [vmem:[%s2963_s3 + $0x38] sm:$0xff] }
 0x1cd   :  { %1084 = vperm.xlu0 %1670, %v526_v2   ;;  %678 = vmatpush.msra.mxu0 %v657_v33 }
 0x1d4   :  { %1078 = vperm.xlu2 %1672, %v524_v25   ;;  %1081 = vperm.xlu1 %1671, %v525_v36   ;;  %v656_v25 = vld [vmem:[%s2963_s3 + $0x30] sm:$0xff]  ;;  %v655_v36 = vld [vmem:[%s2963_s3 + $0x28] sm:$0xff] }
 0x1d5   :  { %1093 = vperm.xlu0 %1670, %v529_v23   ;;  %679 = vmatpush.msra.mxu0 %v656_v25  ;;  %v654_v23 = vld [vmem:[%s2963_s3 + $0x20] sm:$0xff] }
 0x1d7   :  { %680 = vmatpush.msra.mxu0 %v655_v36 }
 0x1d9   :  { %681 = vmatpush.msra.mxu0 %v654_v23 }
 0x1db   :  { %682 = vmatpush.msra.mxu0 %v2441_v18 }
 0x1dc   :  { %1087 = vperm.xlu2 %1672, %v527_v34   ;;  %1090 = vperm.xlu1 %1671, %v528_v61  }
 0x1dd   :  { %683 = vmatpush.msra.mxu0 %v652_v7 }
 0x1e6   :  { %v562_v45 = vpop.permute.xlu2 %561 }
 0x1ee   :  { %v565_v52 = vpop.permute.xlu2 %564 }
 0x1ef   :  { %v607_v46 = vperm.slane %v565_v52, %v2135_v48 }
 0x1f6   :  { %v571_v13 = vpop.permute.xlu2 %570 }
 0x1fe   :  { %v559_v3 = vpop.permute.xlu1 %558  ;;  %v580_v34 = vpop.permute.xlu2 %579 }
 0x1ff   :  { %v556_v2 = vpop.permute.xlu0 %555  ;;  %v603_v61 = vperm.slane %v559_v3, %v2123_v42  ;;  %v605_v3 = vperm.slane %v562_v45, %v2126_v43 }
 0x200   :  { %v602_v24 = vperm.slane %v556_v2, %v2097_v31  ;;  %v651_v2 = vld [vmem:[%s2963_s3 + $0x8] sm:$0xff] }
 0x201   :  { %684 = vmatpush.msra.mxu0 %v651_v2 }
 0x202   :  { %v604_v62 = vsel %vm356_vm2, %v603_v61, %v602_v24 }
 0x203   :  { %v606_v21 = vsel %vm360_vm3, %v605_v3, %v604_v62  ;;  %685 = vmatpush.msra.mxu0 %v650_v60  ;;  %v611_v62 = vperm.slane %v571_v13, %v2157_v57 }
 0x204   :  { %v608_v45 = vsel %vm364_vm4, %v607_v46, %v606_v21 }
 0x205   :  { %1137 = vmatpush.msrb.mxu0 %v665_v19 }
 0x206   :  { %v568_v6 = vpop.permute.xlu1 %567  ;;  %v589_v61 = vpop.permute.xlu2 %588 }
 0x207   :  { %v577_v37 = vpop.permute.xlu0 %576  ;;  %v609_v39 = vperm.slane %v568_v6, %v2154_v56  ;;  %1138 = vmatpush.msrb.mxu0 %v664_v59 }
 0x208   :  { %v615_v52 = vperm.slane %v577_v37, %v2190_v12 }
 0x209   :  { %v610_v16 = vsel %vm368_vm5, %v609_v39, %v608_v45  ;;  %1139 = vmatpush.msrb.mxu0 %v663_v1 }
 0x20a   :  { %v612_v6 = vsel %vm372_vm6, %v611_v62, %v610_v16 }
 0x20b   :  { %1140 = vmatpush.msrb.mxu0 %v662_v5  ;;  %v3050_v5 = vld [vmem:[#allocation28_spill] sm:$0xff] }
 0x20c   :  { %v623_v13 = vperm.slane %v589_v61, %v3050_v5  ;;  %v3055_v61 = vld [vmem:[#allocation38_spill] sm:$0xff] }
 0x20d   :  { %1141 = vmatpush.msrb.mxu0 %v661_v20 }
 0x20e   :  { %v574_v24 = vpop.permute.xlu1 %573  ;;  %v598_v19 = vpop.permute.xlu2 %597 }
 0x20f   :  { %v586_v41 = vpop.permute.xlu0 %585  ;;  %v613_v8 = vperm.slane %v574_v24, %v2185_v10  ;;  %v617_v24 = vperm.slane %v580_v34, %v2195_v15  ;;  %1142 = vmatpush.msrb.mxu0 %v660_v50 }
 0x211   :  { %v614_v3 = vsel %vm376_vm7, %v613_v8, %v612_v6  ;;  %v621_v8 = vperm.slane %v586_v41, %v2235_v22  ;;  %1143 = vmatpush.msrb.mxu0 %v659_v17  ;;  %v629_v17 = vperm.slane %v598_v19, %v2336_v11 }
 0x212   :  { %v616_v46 = vsel %vm380_vm8, %v615_v52, %v614_v3 }
 0x213   :  { %v618_v59 = vsel %vm384_vm9, %v617_v24, %v616_v46  ;;  %1144 = vmatpush.msrb.mxu0 %v658_v53  ;;  %v2480_v46 = vld [vmem:[#allocation3] sm:$0xff] }
 0x215   :  { %1145 = vmatpush.msrb.mxu0 %v657_v33 }
 0x216   :  { %v583_v4 = vpop.permute.xlu1 %582  ;;  %v1052_v50 = vpop.permute.xlu2 %1051 }
 0x217   :  { %v619_v21 = vperm.slane %v583_v4, %v2222_v44  ;;  %v595_v39 = vpop.permute.xlu0 %594  ;;  %v3051_v4 = vld [vmem:[#allocation35_spill] sm:$0xff]  ;;  %1146 = vmatpush.msrb.mxu0 %v656_v25 }
 0x218   :  { %v627_v6 = vperm.slane %v595_v39, %v2322_v26 }
 0x219   :  { %v620_v16 = vsel %vm388_vm10, %v619_v21, %v618_v59  ;;  %1147 = vmatpush.msrb.mxu0 %v655_v36 }
 0x21a   :  { %v622_v37 = vsel %vm392_vm11, %v621_v8, %v620_v16  ;;  %v1096_v16 = vperm.slane %v1052_v50, %v2123_v42 }
 0x21b   :  { %v624_v20 = vsel %vm3052_vm0, %v623_v13, %v622_v37  ;;  %1148 = vmatpush.msrb.mxu0 %v654_v23  ;;  %v2486_v23 = vld [vmem:[#allocation3 + $0x8] sm:$0xff]  ;;  %v2495_v13 = vld [vmem:[#allocation3 + $0x10] sm:$0xf]  ;;  %vm3059_vm0 = vmmov %vm3053_vm1 }
 0x21d   :  { %1149 = vmatpush.msrb.mxu0 %v2441_v18 }
 0x21e   :  { %v592_v1 = vpop.permute.xlu1 %591  ;;  %v1061_v36 = vpop.permute.xlu2 %1060 }
 0x21f   :  { %v625_v45 = vperm.slane %v592_v1, %v3051_v4  ;;  %v1049_v62 = vpop.permute.xlu0 %1048  ;;  %1150 = vmatpush.msrb.mxu0 %v652_v7 }
 0x220   :  { %v1095_v19 = vperm.slane %v1049_v62, %v2097_v31  ;;  %v1102_v62 = vperm.slane %v1061_v36, %v2154_v56 }
 0x221   :  { %v626_v34 = vsel %vm3053_vm1, %v625_v45, %v624_v20  ;;  %1151 = vmatpush.msrb.mxu0 %v651_v2  ;;  %vm3060_vm1 = vmmov %vm3054_vm12 }
 0x222   :  { %v628_v41 = vsel %vm3054_vm12, %v627_v6, %v626_v34  ;;  %v1097_v8 = vsel %vm356_vm2, %v1096_v16, %v1095_v19  ;;  %v720_v19 = vld [vmem:[%s2965_s5 + $0x78] sm:$0xff]  ;;  %vm3061_vm12 = vmmov %vm3056_vm13 }
 0x223   :  { %v630_v33 = vsel %vm3056_vm13, %v629_v17, %v628_v41  ;;  %1152 = vmatpush.msrb.mxu0 %v650_v60  ;;  %725 = vmatpush.msra.mxu1 %v720_v19  ;;  %vm3062_vm13 = vmmov %vm3057_vm14 }
 0x226   :  { %v601_v53 = vpop.permute.xlu1 %600  ;;  %v1070_v1 = vpop.permute.xlu2 %1069 }
 0x227   :  { %v631_v3 = vperm.slane %v601_v53, %v3055_v61  ;;  %v1058_v52 = vpop.permute.xlu0 %1057 }
 0x228   :  { %v1100_v2 = vperm.slane %v1058_v52, %v2135_v48  ;;  %v1108_v52 = vperm.slane %v1070_v1, %v2190_v12 }
 0x229   :  { %v632_v25 = vsel %vm3057_vm14, %v631_v3, %v630_v33 }
 0x22a   :  { %v647_v21 = vmul.f32 %v632_v25, %v2480_v46  ;;  %v648_v18 = vmul.f32 %v632_v25, %v2486_v23  ;;  %v649_v34 = vmul.f32 %v632_v25, %v2495_v13 }
 0x22c   :  { %686 = vmatmul.f32.vlgmr.msra.gmra.mxu0 %v647_v21 }
 0x22e   :  { %v1055_v39 = vpop.permute.xlu1 %1054  ;;  %v1079_v33 = vpop.permute.xlu2 %1078 }
 0x22f   :  { %v1067_v24 = vpop.permute.xlu0 %1066  ;;  %v1098_v59 = vperm.slane %v1055_v39, %v2126_v43 }
 0x230   :  { %v1106_v41 = vperm.slane %v1067_v24, %v2185_v10  ;;  %v719_v24 = vld [vmem:[%s2965_s5 + $0x70] sm:$0xff] }
 0x231   :  { %v1099_v7 = vsel %vm360_vm3, %v1098_v59, %v1097_v8  ;;  %726 = vmatpush.msra.mxu1 %v719_v24 }
 0x232   :  { %v1101_v60 = vsel %vm364_vm4, %v1100_v2, %v1099_v7  ;;  %v718_v7 = vld [vmem:[%s2965_s5 + $0x68] sm:$0xff] }
 0x233   :  { %v1103_v50 = vsel %vm368_vm5, %v1102_v62, %v1101_v60  ;;  %727 = vmatpush.msra.mxu1 %v718_v7  ;;  %v716_v62 = vld [vmem:[%s2965_s5 + $0x58] sm:$0xff] }
 0x234   :  { %689 = vmatmul.f32.gmra.mxu0 %v648_v18  ;;  %v1114_v18 = vperm.slane %v1079_v33, %v2235_v22 }
 0x236   :  { %v1064_v37 = vpop.permute.xlu1 %1063  ;;  %v1088_v60 = vpop.permute.xlu2 %1087 }
 0x237   :  { %v1104_v45 = vperm.slane %v1064_v37, %v2157_v57  ;;  %v1076_v20 = vpop.permute.xlu0 %1075  ;;  %v717_v37 = vld [vmem:[%s2965_s5 + $0x60] sm:$0xff] }
 0x238   :  { %v1112_v39 = vperm.slane %v1076_v20, %v2222_v44  ;;  %728 = vmatpush.msra.mxu1 %v717_v37 }
 0x239   :  { %v1105_v6 = vsel %vm372_vm6, %v1104_v45, %v1103_v50  ;;  %v715_v50 = vld [vmem:[%s2965_s5 + $0x50] sm:$0xff] }
 0x23a   :  { %v1107_v53 = vsel %vm376_vm7, %v1106_v41, %v1105_v6  ;;  %v1120_v6 = vperm.slane %v1088_v60, %v2322_v26  ;;  %729 = vmatpush.msra.mxu1 %v716_v62  ;;  %v706_v60 = vld [vmem:[%s2965_s5 + $0x8] sm:$0xff] }
 0x23b   :  { %v1109_v21 = vsel %vm380_vm8, %v1108_v52, %v1107_v53  ;;  %v714_v53 = vld [vmem:[%s2965_s5 + $0x48] sm:$0xff] }
 0x23c   :  { %692 = vmatmul.f32.gmra.mxu0 %v649_v34  ;;  %730 = vmatpush.msra.mxu1 %v715_v50 }
 0x23e   :  { %v1073_v17 = vpop.permute.xlu1 %1072  ;;  %731 = vmatpush.msra.mxu1 %v714_v53 }
 0x23f   :  { %v1110_v3 = vperm.slane %v1073_v17, %v2195_v15  ;;  %v1085_v25 = vpop.permute.xlu0 %1084 }
 0x240   :  { %v1118_v45 = vperm.slane %v1085_v25, %v3051_v4 }
 0x241   :  { %v1111_v36 = vsel %vm384_vm9, %v1110_v3, %v1109_v21  ;;  %v713_v21 = vld [vmem:[%s2965_s5 + $0x40] sm:$0xff] }
 0x242   :  { %v1113_v59 = vsel %vm388_vm10, %v1112_v39, %v1111_v36  ;;  %v712_v39 = vld [vmem:[%s2965_s5 + $0x38] sm:$0xff]  ;;  %732 = vmatpush.msra.mxu1 %v713_v21 }
 0x243   :  { %v1115_v2 = vsel %vm392_vm11, %v1114_v18, %v1113_v59  ;;  %v711_v59 = vld [vmem:[%s2965_s5 + $0x30] sm:$0xff] }
 0x244   :  { %733 = vmatpush.msra.mxu1 %v712_v39 }
 0x246   :  { %v1082_v16 = vpop.permute.xlu1 %1081  ;;  %734 = vmatpush.msra.mxu1 %v711_v59 }
 0x247   :  { %v1116_v8 = vperm.slane %v1082_v16, %v3050_v5  ;;  %v1094_v34 = vpop.permute.xlu0 %1093  ;;  %v710_v16 = vld [vmem:[%s2965_s5 + $0x28] sm:$0xff] }
 0x248   :  { %v1124_v3 = vperm.slane %v1094_v34, %v3055_v61  ;;  %735 = vmatpush.msra.mxu1 %v710_v16 }
 0x249   :  { %v1117_v1 = vsel %vm3058_vm15, %v1116_v8, %v1115_v2  ;;  %v708_v8 = vld [vmem:[%s2965_s5 + $0x18] sm:$0xff] }
 0x24a   :  { %v1119_v20 = vsel %vm3059_vm0, %v1118_v45, %v1117_v1  ;;  %v707_v1 = vld [vmem:[%s2965_s5 + $0x10] sm:$0xff] }
 0x24b   :  { %v1121_v52 = vsel %vm3060_vm1, %v1120_v6, %v1119_v20 }
 0x24e   :  { %v1091_v41 = vpop.permute.xlu1 %1090 }
 0x24f   :  { %v1122_v17 = vperm.slane %v1091_v41, %v2336_v11 }
 0x251   :  { %v1123_v33 = vsel %vm3061_vm12, %v1122_v17, %v1121_v52  ;;  %v773_v52 = vld [vmem:[%s2967_s7 + $0x68] sm:$0xff] }
 0x252   :  { %v1125_v36 = vsel %vm3062_vm13, %v1124_v3, %v1123_v33  ;;  %v774_v3 = vld [vmem:[%s2967_s7 + $0x70] sm:$0xff]  ;;  %v772_v33 = vld [vmem:[%s2967_s7 + $0x60] sm:$0xff] }
 0x253   :  { %v1134_v25 = vmul.f32 %v1125_v36, %v2480_v46  ;;  %v709_v46 = vld [vmem:[%s2965_s5 + $0x20] sm:$0xff]  ;;  %v1135_v18 = vmul.f32 %v1125_v36, %v2486_v23  ;;  %v1136_v2 = vmul.f32 %v1125_v36, %v2495_v13  ;;  %v770_v36 = vld [vmem:[%s2967_s7 + $0x50] sm:$0xff] }
 0x254   :  { %736 = vmatpush.msra.mxu1 %v709_v46  ;;  %v705_v23 = vld [vmem:[%s2965_s5] sm:$0xff] }
 0x255   :  { %1153 = vmatmul.f32.vlgmr.msrb.gmra.mxu0 %v1134_v25  ;;  %v2577_v13 = vld [vmem:[%s2964_s4] ss:$0 sm:$0xff] }
 0x256   :  { %737 = vmatpush.msra.mxu1 %v708_v8 }
 0x258   :  { %738 = vmatpush.msra.mxu1 %v707_v1 }
 0x25a   :  { %739 = vmatpush.msra.mxu1 %v706_v60 }
 0x25c   :  { %740 = vmatpush.msra.mxu1 %v705_v23 }
 0x25d   :  { %1156 = vmatmul.f32.gmra.mxu0 %v1135_v18  ;;  %v767_v18 = vld [vmem:[%s2967_s7 + $0x38] sm:$0xff] }
 0x25e   :  { %1172 = vmatpush.msrb.mxu1 %v720_v19 }
 0x260   :  { %1173 = vmatpush.msrb.mxu1 %v719_v24 }
 0x262   :  { %1174 = vmatpush.msrb.mxu1 %v718_v7 }
 0x264   :  { %1175 = vmatpush.msrb.mxu1 %v717_v37 }
 0x265   :  { %1159 = vmatmul.f32.gmra.mxu0 %v1136_v2  ;;  %v766_v2 = vld [vmem:[%s2967_s7 + $0x30] sm:$0xff] }
 0x266   :  { %1176 = vmatpush.msrb.mxu1 %v716_v62 }
 0x268   :  { %1177 = vmatpush.msrb.mxu1 %v715_v50 }
 0x26a   :  { %1178 = vmatpush.msrb.mxu1 %v714_v53  ;;  %v775_v53 = vld [vmem:[%s2967_s7 + $0x78] sm:$0xff] }
 0x26b   :  { %780 = vmatpush.msra.mxu2 %v775_v53 }
 0x26c   :  { %1179 = vmatpush.msrb.mxu1 %v713_v21  ;;  %v771_v21 = vld [vmem:[%s2967_s7 + $0x58] sm:$0xff] }
 0x26d   :  { %781 = vmatpush.msra.mxu2 %v774_v3 }
 0x26e   :  { %1180 = vmatpush.msrb.mxu1 %v712_v39  ;;  %v769_v39 = vld [vmem:[%s2967_s7 + $0x48] sm:$0xff] }
 0x26f   :  { %782 = vmatpush.msra.mxu2 %v773_v52 }
 0x270   :  { %1181 = vmatpush.msrb.mxu1 %v711_v59 }
 0x271   :  { %783 = vmatpush.msra.mxu2 %v772_v33 }
 0x272   :  { %1182 = vmatpush.msrb.mxu1 %v710_v16  ;;  %v768_v16 = vld [vmem:[%s2967_s7 + $0x40] sm:$0xff] }
 0x273   :  { %784 = vmatpush.msra.mxu2 %v771_v21 }
 0x274   :  { %1183 = vmatpush.msrb.mxu1 %v709_v46 }
 0x275   :  { %785 = vmatpush.msra.mxu2 %v770_v36 }
 0x276   :  { %1184 = vmatpush.msrb.mxu1 %v708_v8 }
 0x277   :  { %786 = vmatpush.msra.mxu2 %v769_v39 }
 0x278   :  { %1185 = vmatpush.msrb.mxu1 %v707_v1 }
 0x279   :  { %787 = vmatpush.msra.mxu2 %v768_v16 }
 0x27a   :  { %1186 = vmatpush.msrb.mxu1 %v706_v60  ;;  %v765_v60 = vld [vmem:[%s2967_s7 + $0x28] sm:$0xff] }
 0x27b   :  { %788 = vmatpush.msra.mxu2 %v767_v18 }
 0x27c   :  { %1187 = vmatpush.msrb.mxu1 %v705_v23 }
 0x27d   :  { %789 = vmatpush.msra.mxu2 %v766_v2 }
 0x27f   :  { %790 = vmatpush.msra.mxu2 %v765_v60 }
 0x2a9   :  { %v687_v45 = vpop.f32.mrf.mxu0 }
 0x2aa   :  { %v688_v19 = vadd.f32 %v2577_v13, %v687_v45  ;;  %v764_v45 = vld [vmem:[%s2967_s7 + $0x20] sm:$0xff] }
 0x2ab   :  { %791 = vmatpush.msra.mxu2 %v764_v45 }
 0x2ac   :  { %vm696_vm14 = vcmp.ge.f32.partialorder %v688_v19, 0.0  ;;  %v699_v24 = vmul.f32 0.01, %v688_v19 }
 0x2ae   :  { %v702_v7 = vsel %vm696_vm14, %v688_v19, %v699_v24  ;;  %v763_v24 = vld [vmem:[%s2967_s7 + $0x18] sm:$0xff] }
 0x2af   :  { %741 = vmatmul.f32.vlgmr.msra.gmra.mxu1 %v702_v7  ;;  %792 = vmatpush.msra.mxu2 %v763_v24 }
 0x2b1   :  { %v690_v37 = vpop.f32.mrf.mxu0 }
 0x2b2   :  { %v691_v62 = vadd.f32 %v2577_v13, %v690_v37 }
 0x2b4   :  { %vm697_vm15 = vcmp.ge.f32.partialorder %v691_v62, 0.0  ;;  %v700_v20 = vmul.f32 0.01, %v691_v62 }
 0x2b6   :  { %v703_v34 = vsel %vm697_vm15, %v691_v62, %v700_v20 }
 0x2b7   :  { %744 = vmatmul.f32.gmra.mxu1 %v703_v34 }
 0x2b9   :  { %v693_v50 = vpop.f32.mrf.mxu0 }
 0x2ba   :  { %v694_v6 = vadd.f32 %v2577_v13, %v693_v50  ;;  %v762_v50 = vld [vmem:[%s2967_s7 + $0x10] sm:$0xff] }
 0x2bb   :  { %793 = vmatpush.msra.mxu2 %v762_v50 }
 0x2bc   :  { %vm698_vm0 = vcmp.ge.f32.partialorder %v694_v6, 0.0  ;;  %v701_v41 = vmul.f32 0.01, %v694_v6 }
 0x2be   :  { %v704_v17 = vsel %vm698_vm0, %v694_v6, %v701_v41  ;;  %v761_v6 = vld [vmem:[%s2967_s7 + $0x8] sm:$0xff]  ;;  %v760_v41 = vld [vmem:[%s2967_s7] sm:$0xff] }
 0x2bf   :  { %747 = vmatmul.f32.gmra.mxu1 %v704_v17  ;;  %794 = vmatpush.msra.mxu2 %v761_v6 }
 0x2c1   :  { %795 = vmatpush.msra.mxu2 %v760_v41 }
 0x2c3   :  { %1207 = vmatpush.msrb.mxu2 %v775_v53 }
 0x2c5   :  { %1208 = vmatpush.msrb.mxu2 %v774_v3 }
 0x2c7   :  { %1209 = vmatpush.msrb.mxu2 %v773_v52 }
 0x2c9   :  { %1210 = vmatpush.msrb.mxu2 %v772_v33 }
 0x2cb   :  { %1211 = vmatpush.msrb.mxu2 %v771_v21 }
 0x2cd   :  { %1212 = vmatpush.msrb.mxu2 %v770_v36 }
 0x2cf   :  { %1213 = vmatpush.msrb.mxu2 %v769_v39 }
 0x2d1   :  { %1214 = vmatpush.msrb.mxu2 %v768_v16 }
 0x2d2   :  { %v1154_v25 = vpop.f32.mrf.mxu0 }
 0x2d3   :  { %v1155_v59 = vadd.f32 %v2577_v13, %v1154_v25  ;;  %1215 = vmatpush.msrb.mxu2 %v767_v18  ;;  %v830_v18 = vld [vmem:[#allocation8 + $0x78] sm:$0xff] }
 0x2d4   :  { %835 = vmatpush.msra.mxu3 %v830_v18 }
 0x2d5   :  { %v1166_v46 = vmul.f32 0.01, %v1155_v59  ;;  %vm1163_vm1 = vcmp.ge.f32.partialorder %v1155_v59, 0.0  ;;  %1216 = vmatpush.msrb.mxu2 %v766_v2  ;;  %v828_v2 = vld [vmem:[#allocation8 + $0x68] sm:$0xff] }
 0x2d7   :  { %v1169_v8 = vsel %vm1163_vm1, %v1155_v59, %v1166_v46  ;;  %1217 = vmatpush.msrb.mxu2 %v765_v60  ;;  %v826_v60 = vld [vmem:[#allocation8 + $0x58] sm:$0xff] }
 0x2d8   :  { %1188 = vmatmul.f32.vlgmr.msrb.gmra.mxu1 %v1169_v8  ;;  %v829_v8 = vld [vmem:[#allocation8 + $0x70] sm:$0xff] }
 0x2d9   :  { %1218 = vmatpush.msrb.mxu2 %v764_v45  ;;  %836 = vmatpush.msra.mxu3 %v829_v8 }
 0x2da   :  { %v1157_v1 = vpop.f32.mrf.mxu0 }
 0x2db   :  { %v1158_v23 = vadd.f32 %v2577_v13, %v1157_v1  ;;  %1219 = vmatpush.msrb.mxu2 %v763_v24  ;;  %v827_v1 = vld [vmem:[#allocation8 + $0x60] sm:$0xff]  ;;  %837 = vmatpush.msra.mxu3 %v828_v2 }
 0x2dd   :  { %vm1164_vm12 = vcmp.ge.f32.partialorder %v1158_v23, 0.0  ;;  %v1167_v19 = vmul.f32 0.01, %v1158_v23  ;;  %1220 = vmatpush.msrb.mxu2 %v762_v50  ;;  %838 = vmatpush.msra.mxu3 %v827_v1 }
 0x2df   :  { %v1170_v7 = vsel %vm1164_vm12, %v1158_v23, %v1167_v19  ;;  %1221 = vmatpush.msrb.mxu2 %v761_v6  ;;  %v825_v23 = vld [vmem:[#allocation8 + $0x50] sm:$0xff]  ;;  %839 = vmatpush.msra.mxu3 %v826_v60  ;;  %v824_v19 = vld [vmem:[#allocation8 + $0x48] sm:$0xff] }
 0x2e0   :  { %1191 = vmatmul.f32.gmra.mxu1 %v1170_v7  ;;  %v823_v7 = vld [vmem:[#allocation8 + $0x40] sm:$0xff]  ;;  %v820_v6 = vld [vmem:[#allocation8 + $0x28] sm:$0xff] }
 0x2e1   :  { %1222 = vmatpush.msrb.mxu2 %v760_v41  ;;  %840 = vmatpush.msra.mxu3 %v825_v23 }
 0x2e2   :  { %v1160_v37 = vpop.f32.mrf.mxu0 }
 0x2e3   :  { %v1161_v62 = vadd.f32 %v2577_v13, %v1160_v37  ;;  %v2636_v13 = vld [vmem:[%s2966_s6] ss:$0 sm:$0xff]  ;;  %841 = vmatpush.msra.mxu3 %v824_v19 }
 0x2e5   :  { %vm1165_vm13 = vcmp.ge.f32.partialorder %v1161_v62, 0.0  ;;  %v1168_v20 = vmul.f32 0.01, %v1161_v62  ;;  %842 = vmatpush.msra.mxu3 %v823_v7 }
 0x2e7   :  { %v1171_v34 = vsel %vm1165_vm13, %v1161_v62, %v1168_v20  ;;  %v822_v62 = vld [vmem:[#allocation8 + $0x38] sm:$0xff] }
 0x2e8   :  { %1194 = vmatmul.f32.gmra.mxu1 %v1171_v34  ;;  %v821_v34 = vld [vmem:[#allocation8 + $0x30] sm:$0xff]  ;;  %843 = vmatpush.msra.mxu3 %v822_v62 }
 0x2ea   :  { %844 = vmatpush.msra.mxu3 %v821_v34 }
 0x2ec   :  { %845 = vmatpush.msra.mxu3 %v820_v6 }
 0x32c   :  { %v742_v17 = vpop.f32.mrf.mxu1 }
 0x32d   :  { %v743_v53 = vadd.f32 %v2636_v13, %v742_v17  ;;  %v819_v17 = vld [vmem:[#allocation8 + $0x20] sm:$0xff] }
 0x32e   :  { %846 = vmatpush.msra.mxu3 %v819_v17 }
 0x32f   :  { %vm751_vm14 = vcmp.ge.f32.partialorder %v743_v53, 0.0  ;;  %v754_v3 = vmul.f32 0.01, %v743_v53 }
 0x331   :  { %v757_v52 = vsel %vm751_vm14, %v743_v53, %v754_v3  ;;  %v818_v3 = vld [vmem:[#allocation8 + $0x18] sm:$0xff] }
 0x332   :  { %796 = vmatmul.f32.vlgmr.msra.gmra.mxu2 %v757_v52  ;;  %847 = vmatpush.msra.mxu3 %v818_v3 }
 0x334   :  { %v745_v33 = vpop.f32.mrf.mxu1 }
 0x335   :  { %v746_v21 = vadd.f32 %v2636_v13, %v745_v33 }
 0x337   :  { %vm752_vm15 = vcmp.ge.f32.partialorder %v746_v21, 0.0  ;;  %v755_v36 = vmul.f32 0.01, %v746_v21 }
 0x339   :  { %v758_v25 = vsel %vm752_vm15, %v746_v21, %v755_v36 }
 0x33a   :  { %799 = vmatmul.f32.gmra.mxu2 %v758_v25 }
 0x33c   :  { %v748_v39 = vpop.f32.mrf.mxu1 }
 0x33d   :  { %v749_v59 = vadd.f32 %v2636_v13, %v748_v39  ;;  %v817_v39 = vld [vmem:[#allocation8 + $0x10] sm:$0xff] }
 0x33e   :  { %848 = vmatpush.msra.mxu3 %v817_v39 }
 0x33f   :  { %vm753_vm0 = vcmp.ge.f32.partialorder %v749_v59, 0.0  ;;  %v756_v16 = vmul.f32 0.01, %v749_v59 }
 0x341   :  { %v759_v46 = vsel %vm753_vm0, %v749_v59, %v756_v16  ;;  %v816_v59 = vld [vmem:[#allocation8 + $0x8] sm:$0xff]  ;;  %v815_v16 = vld [vmem:[#allocation8] sm:$0xff] }
 0x342   :  { %802 = vmatmul.f32.gmra.mxu2 %v759_v46  ;;  %849 = vmatpush.msra.mxu3 %v816_v59 }
 0x344   :  { %850 = vmatpush.msra.mxu3 %v815_v16 }
 0x346   :  { %1242 = vmatpush.msrb.mxu3 %v830_v18 }
 0x348   :  { %1243 = vmatpush.msrb.mxu3 %v829_v8 }
 0x34a   :  { %1244 = vmatpush.msrb.mxu3 %v828_v2 }
 0x34c   :  { %1245 = vmatpush.msrb.mxu3 %v827_v1 }
 0x34e   :  { %1246 = vmatpush.msrb.mxu3 %v826_v60 }
 0x350   :  { %1247 = vmatpush.msrb.mxu3 %v825_v23 }
 0x352   :  { %1248 = vmatpush.msrb.mxu3 %v824_v19 }
 0x354   :  { %1249 = vmatpush.msrb.mxu3 %v823_v7 }
 0x355   :  { %v1189_v45 = vpop.f32.mrf.mxu1 }
 0x356   :  { %v1190_v24 = vadd.f32 %v2636_v13, %v1189_v45  ;;  %1250 = vmatpush.msrb.mxu3 %v822_v62 }
 0x358   :  { %v1201_v37 = vmul.f32 0.01, %v1190_v24  ;;  %vm1198_vm1 = vcmp.ge.f32.partialorder %v1190_v24, 0.0  ;;  %1251 = vmatpush.msrb.mxu3 %v821_v34 }
 0x35a   :  { %v1204_v20 = vsel %vm1198_vm1, %v1190_v24, %v1201_v37  ;;  %1252 = vmatpush.msrb.mxu3 %v820_v6 }
 0x35b   :  { %1223 = vmatmul.f32.vlgmr.msrb.gmra.mxu2 %v1204_v20 }
 0x35c   :  { %1253 = vmatpush.msrb.mxu3 %v819_v17 }
 0x35d   :  { %v1192_v50 = vpop.f32.mrf.mxu1 }
 0x35e   :  { %v1193_v41 = vadd.f32 %v2636_v13, %v1192_v50  ;;  %1254 = vmatpush.msrb.mxu3 %v818_v3 }
 0x360   :  { %vm1199_vm12 = vcmp.ge.f32.partialorder %v1193_v41, 0.0  ;;  %v1202_v53 = vmul.f32 0.01, %v1193_v41  ;;  %1255 = vmatpush.msrb.mxu3 %v817_v39 }
 0x362   :  { %v1205_v52 = vsel %vm1199_vm12, %v1193_v41, %v1202_v53  ;;  %1256 = vmatpush.msrb.mxu3 %v816_v59  ;;  %v1677_v59 = vld [vmem:[%s2971_s11] ss:$0 sm:$0xff] }
 0x363   :  { %1226 = vmatmul.f32.gmra.mxu2 %v1205_v52 }
 0x364   :  { %1257 = vmatpush.msrb.mxu3 %v815_v16 }
 0x365   :  { %v1195_v33 = vpop.f32.mrf.mxu1 }
 0x366   :  { %v1196_v21 = vadd.f32 %v2636_v13, %v1195_v33  ;;  %v1675_v13 = vld [vmem:[%s2968_s8] ss:$0 sm:$0xff] }
 0x368   :  { %vm1200_vm13 = vcmp.ge.f32.partialorder %v1196_v21, 0.0  ;;  %v1203_v36 = vmul.f32 0.01, %v1196_v21 }
 0x36a   :  { %v1206_v25 = vsel %vm1200_vm13, %v1196_v21, %v1203_v36  ;;  %v1676_v36 = vld [vmem:[%s2970_s10] ss:$0 sm:$0xff] }
 0x36b   :  { %1229 = vmatmul.f32.gmra.mxu2 %v1206_v25 }
 0x3b5   :  { %v797_v46 = vpop.f32.mrf.mxu2 }
 0x3b6   :  { %v798_v45 = vadd.f32 %v1675_v13, %v797_v46 }
 0x3b8   :  { %vm806_vm14 = vcmp.ge.f32.partialorder %v798_v45, 0.0  ;;  %v809_v18 = vmul.f32 0.01, %v798_v45 }
 0x3ba   :  { %v812_v8 = vsel %vm806_vm14, %v798_v45, %v809_v18 }
 0x3bb   :  { %851 = vmatmul.f32.vlgmr.msra.gmra.mxu3 %v812_v8 }
 0x3bd   :  { %v800_v2 = vpop.f32.mrf.mxu2 }
 0x3be   :  { %v801_v1 = vadd.f32 %v1675_v13, %v800_v2 }
 0x3c0   :  { %vm807_vm15 = vcmp.ge.f32.partialorder %v801_v1, 0.0  ;;  %v810_v60 = vmul.f32 0.01, %v801_v1 }
 0x3c2   :  { %v813_v23 = vsel %vm807_vm15, %v801_v1, %v810_v60 }
 0x3c3   :  { %854 = vmatmul.f32.gmra.mxu3 %v813_v23 }
 0x3c5   :  { %v803_v19 = vpop.f32.mrf.mxu2 }
 0x3c6   :  { %v804_v24 = vadd.f32 %v1675_v13, %v803_v19 }
 0x3c8   :  { %vm808_vm0 = vcmp.ge.f32.partialorder %v804_v24, 0.0  ;;  %v811_v7 = vmul.f32 0.01, %v804_v24 }
 0x3ca   :  { %v814_v37 = vsel %vm808_vm0, %v804_v24, %v811_v7 }
 0x3cb   :  { %857 = vmatmul.f32.gmra.mxu3 %v814_v37 }
 0x3de   :  { %v1224_v62 = vpop.f32.mrf.mxu2 }
 0x3df   :  { %v1225_v20 = vadd.f32 %v1675_v13, %v1224_v62 }
 0x3e1   :  { %v1236_v34 = vmul.f32 0.01, %v1225_v20  ;;  %vm1233_vm1 = vcmp.ge.f32.partialorder %v1225_v20, 0.0 }
 0x3e3   :  { %v1239_v50 = vsel %vm1233_vm1, %v1225_v20, %v1236_v34 }
 0x3e4   :  { %1258 = vmatmul.f32.vlgmr.msrb.gmra.mxu3 %v1239_v50 }
 0x3e6   :  { %v1227_v6 = vpop.f32.mrf.mxu2 }
 0x3e7   :  { %v1228_v41 = vadd.f32 %v1675_v13, %v1227_v6 }
 0x3e9   :  { %vm1234_vm12 = vcmp.ge.f32.partialorder %v1228_v41, 0.0  ;;  %v1237_v17 = vmul.f32 0.01, %v1228_v41 }
 0x3eb   :  { %v1240_v53 = vsel %vm1234_vm12, %v1228_v41, %v1237_v17 }
 0x3ec   :  { %1261 = vmatmul.f32.gmra.mxu3 %v1240_v53 }
 0x3ee   :  { %v1230_v3 = vpop.f32.mrf.mxu2 }
 0x3ef   :  { %v1231_v52 = vadd.f32 %v1675_v13, %v1230_v3 }
 0x3f1   :  { %vm1235_vm13 = vcmp.ge.f32.partialorder %v1231_v52, 0.0  ;;  %v1238_v33 = vmul.f32 0.01, %v1231_v52 }
 0x3f3   :  { %v1241_v21 = vsel %vm1235_vm13, %v1231_v52, %v1238_v33  ;;  %vm880_vm13 = vcmask 1043456  }
 0x3f4   :  { %1264 = vmatmul.f32.gmra.mxu3 %v1241_v21 }
 0x43e   :  { %v852_v25 = vpop.f32.mrf.mxu3 }
 0x43f   :  { %v853_v39 = vadd.f32 %v1676_v36, %v852_v25 }
 0x441   :  { %v864_v16 = vmul.f32 0.01, %v853_v39  ;;  %vm861_vm14 = vcmp.ge.f32.partialorder %v853_v39, 0.0 }
 0x443   :  { %v867_v46 = vsel %vm861_vm14, %v853_v39, %v864_v16 }
 0x444   :  { %v873_v45 = vmul.f32 %v1677_v59, %v867_v46 }
 0x446   :  { %v855_v18 = vpop.f32.mrf.mxu3  ;;  %876 = vadd.xlane.f32.xlu0 %v873_v45 }
 0x447   :  { %v856_v13 = vadd.f32 %v1676_v36, %v855_v18 }
 0x449   :  { %v865_v8 = vmul.f32 0.01, %v856_v13  ;;  %vm862_vm15 = vcmp.ge.f32.partialorder %v856_v13, 0.0 }
 0x44b   :  { %v868_v2 = vsel %vm862_vm15, %v856_v13, %v865_v8  ;;  %v1678_v13 = vld [vmem:[#allocation2] ss:$0 sm:$0xff]  ;;  %vm890_vm15 = vcmask 7168  }
 0x44c   :  { %v874_v1 = vmul.f32 %v1677_v59, %v868_v2 }
 0x44e   :  { %878 = vadd.xlane.f32.xlu2 %v874_v1  ;;  %v858_v60 = vpop.f32.mrf.mxu3 }
 0x44f   :  { %v859_v23 = vadd.f32 %v1676_v36, %v858_v60 }
 0x451   :  { %v866_v37 = vmul.f32 0.01, %v859_v23  ;;  %vm863_vm1 = vcmp.ge.f32.partialorder %v859_v23, 0.0 }
 0x453   :  { %v869_v50 = vsel %vm863_vm1, %v859_v23, %v866_v37  ;;  %vm3074_vm1 = vcmask 786112  }
 0x454   :  { %v875_v17 = vmul.f32 %v1677_v59, %v869_v50 }
 0x456   :  { %v881_v52 = vsel %vm880_vm13, %v875_v17, 0.0 }
 0x467   :  { %v1259_v19 = vpop.f32.mrf.mxu3 }
 0x468   :  { %v1260_v24 = vadd.f32 %v1676_v36, %v1259_v19 }
 0x46a   :  { %v1271_v7 = vmul.f32 0.01, %v1260_v24  ;;  %vm1268_vm0 = vcmp.ge.f32.partialorder %v1260_v24, 0.0 }
 0x46c   :  { %v1274_v62 = vsel %vm1268_vm0, %v1260_v24, %v1271_v7  ;;  %vm893_vm0 = vcmask 3072  }
 0x46d   :  { %v1277_v20 = vmul.f32 %v1677_v59, %v1274_v62 }
 0x46f   :  { %v1262_v34 = vpop.f32.mrf.mxu3  ;;  %1280 = vadd.xlane.f32.xlu2 %v1277_v20 }
 0x470   :  { %v1263_v6 = vadd.f32 %v1676_v36, %v1262_v34 }
 0x472   :  { %v1272_v41 = vmul.f32 0.01, %v1263_v6  ;;  %vm1269_vm12 = vcmp.ge.f32.partialorder %v1263_v6, 0.0 }
 0x474   :  { %v1275_v53 = vsel %vm1269_vm12, %v1263_v6, %v1272_v41  ;;  %vm3075_vm12 = vmmov %vm3074_vm1 }
 0x475   :  { %v1278_v3 = vmul.f32 %v1677_v59, %v1275_v53 }
 0x477   :  { %v1265_v33 = vpop.f32.mrf.mxu3  ;;  %1282 = vadd.xlane.f32.xlu1 %v1278_v3  ;;  %882 = vadd.xlane.f32.xlu2 %v881_v52 }
 0x478   :  { %v1266_v21 = vadd.f32 %v1676_v36, %v1265_v33 }
 0x47a   :  { %vm1270_vm14 = vcmp.ge.f32.partialorder %v1266_v21, 0.0  ;;  %v1273_v25 = vmul.f32 0.01, %v1266_v21 }
 0x47c   :  { %v1276_v39 = vsel %vm1270_vm14, %v1266_v21, %v1273_v25  ;;  %vm3078_vm14 = vcmask 917312  }
 0x47d   :  { %v1279_v16 = vmul.f32 %v1677_v59, %v1276_v39 }
 0x47f   :  { %v1284_v46 = vsel %vm880_vm13, %v1279_v16, 0.0 }
 0x480   :  { %1285 = vadd.xlane.f32.xlu1 %v1284_v46 }
 0x4b9   :  { %v877_v8 = vpop.xlane.xlu0 %876 }
 0x4ba   :  { %v887_v1 = vadd.f32 %v1678_v13, %v877_v8 }
 0x4bc   :  { %v891_v36 = vsel %vm890_vm15, %v887_v1, -inf }
 0x4c1   :  { %v879_v45 = vpop.xlane.xlu2 %878 }
 0x4c2   :  { %v888_v2 = vadd.f32 %v1678_v13, %v879_v45 }
 0x4c4   :  { %v892_v60 = vsel %vm890_vm15, %v888_v2, -inf }
 0x4c5   :  { %v895_v7 = vmax.f32 %v891_v36, %v892_v60 }
 0x4e2   :  { %v1281_v18 = vpop.xlane.xlu2 %1280 }
 0x4e3   :  { %v1287_v20 = vadd.f32 %v1678_v13, %v1281_v18 }
 0x4e5   :  { %v1290_v17 = vsel %vm890_vm15, %v1287_v20, -inf }
 0x4ea   :  { %v1283_v23 = vpop.xlane.xlu1 %1282  ;;  %v883_v19 = vpop.xlane.xlu2 %882 }
 0x4eb   :  { %v889_v24 = vadd.f32 %v1678_v13, %v883_v19  ;;  %v1288_v37 = vadd.f32 %v1678_v13, %v1283_v23 }
 0x4ed   :  { %v894_v59 = vsel %vm893_vm0, %v889_v24, -inf  ;;  %v1291_v50 = vsel %vm890_vm15, %v1288_v37, -inf }
 0x4ee   :  { %v896_v62 = vmax.f32 %v895_v7, %v894_v59  ;;  %v1293_v52 = vmax.f32 %v1290_v17, %v1291_v50 }
 0x4f0   :  { %v897_v34 = vrot.slane %v896_v62, 4 }
 0x4f2   :  { %v898_v6 = vmax.f32 %v896_v62, %v897_v34 }
 0x4f3   :  { %v1286_v41 = vpop.xlane.xlu1 %1285 }
 0x4f4   :  { %v899_v53 = vrot.slane %v898_v6, 2  ;;  %v1289_v3 = vadd.f32 %v1678_v13, %v1286_v41 }
 0x4f6   :  { %v900_v33 = vmax.f32 %v898_v6, %v899_v53  ;;  %v1292_v21 = vsel %vm893_vm0, %v1289_v3, -inf }
 0x4f7   :  { %v1294_v25 = vmax.f32 %v1293_v52, %v1292_v21 }
 0x4f8   :  { %v901_v39 = vrot.slane %v900_v33, 1 }
 0x4f9   :  { %v1295_v16 = vrot.slane %v1294_v25, 4 }
 0x4fa   :  { %v902_v46 = vmax.f32 %v900_v33, %v901_v39 }
 0x4fb   :  { %v1296_v45 = vmax.f32 %v1294_v25, %v1295_v16 }
 0x4fc   :  { %v903_v8 = vmax.f32 %v902_v46, 0.0 }
 0x4fd   :  { %v1297_v18 = vrot.slane %v1296_v45, 2 }
 0x4fe   :  { %v904_v60 = vsub.f32 %v887_v1, %v903_v8  ;;  %v905_v23 = vsub.f32 %v888_v2, %v903_v8  ;;  %v906_v19 = vsub.f32 %v889_v24, %v903_v8  ;;  %v913_v46 = vsub.f32 0.0, %v903_v8 }
 0x4ff   :  { %v1298_v36 = vmax.f32 %v1296_v45, %v1297_v18 }
 0x500   :  { %v907_v7 = vmul.f32 1.442695, %v904_v60  ;;  %v909_v59 = vmul.f32 1.442695, %v905_v23  ;;  %v911_v62 = vmul.f32 1.442695, %v906_v19 }
 0x501   :  { %v1299_v34 = vrot.slane %v1298_v36, 1 }
 0x502   :  { %1688 = vpow2.f32 %v907_v7 }
 0x503   :  { %1690 = vpow2.f32 %v909_v59  ;;  %v1300_v13 = vmax.f32 %v1298_v36, %v1299_v34 }
 0x504   :  { %1692 = vpow2.f32 %v911_v62 }
 0x505   :  { %v1301_v50 = vmax.f32 %v1300_v13, 0.0 }
 0x507   :  { %v1302_v6 = vsub.f32 %v1287_v20, %v1301_v50  ;;  %v1304_v41 = vsub.f32 %v1289_v3, %v1301_v50  ;;  %v1303_v17 = vsub.f32 %v1288_v37, %v1301_v50  ;;  %v914_v37 = vmul.f32 1.442695, %v913_v46 }
 0x508   :  { %v1689_v53 = vpop.eup %1688  ;;  %v1311_v13 = vsub.f32 0.0, %v1301_v50 }
 0x509   :  { %v1691_v52 = vpop.eup %1690  ;;  %v916_v33 = vsel %vm890_vm15, %v1689_v53, 0.0  ;;  %v1305_v1 = vmul.f32 1.442695, %v1302_v6  ;;  %v1309_v2 = vmul.f32 1.442695, %v1304_v41 }
 0x50a   :  { %v1693_v24 = vpop.eup %1692  ;;  %v917_v21 = vsel %vm890_vm15, %v1691_v52, 0.0  ;;  %v1307_v25 = vmul.f32 1.442695, %v1303_v17 }
 0x50b   :  { %v918_v39 = vadd.f32 %v917_v21, %v916_v33  ;;  %1694 = vpow2.f32 %v1305_v1  ;;  %v919_v16 = vsel %vm893_vm0, %v1693_v24, 0.0  ;;  %v1312_v1 = vmul.f32 1.442695, %v1311_v13 }
 0x50c   :  { %1696 = vpow2.f32 %v1309_v2 }
 0x50d   :  { %v920_v45 = vadd.f32 %v919_v16, %v918_v39  ;;  %1698 = vpow2.f32 %v1307_v25 }
 0x50e   :  { %1700 = vpow2.f32 %v914_v37 }
 0x50f   :  { %v921_v20 = vrot.slane %v920_v45, 4 }
 0x511   :  { %v1695_v3 = vpop.eup %1694  ;;  %v922_v18 = vadd.f32 %v921_v20, %v920_v45 }
 0x512   :  { %v1697_v60 = vpop.eup %1696  ;;  %v1314_v19 = vsel %vm890_vm15, %v1695_v3, 0.0 }
 0x513   :  { %v923_v23 = vrot.slane %v922_v18, 2  ;;  %v1699_v36 = vpop.eup %1698  ;;  %v1317_v8 = vsel %vm893_vm0, %v1697_v60, 0.0  ;;  %vm3081_vm0 = vcmask 982912  }
 0x514   :  { %v1315_v59 = vsel %vm890_vm15, %v1699_v36, 0.0  ;;  %v1701_v17 = vpop.eup %1700 }
 0x515   :  { %v924_v7 = vadd.f32 %v923_v23, %v922_v18  ;;  %v1316_v62 = vadd.f32 %v1315_v59, %v1314_v19 }
 0x517   :  { %v925_v34 = vrot.slane %v924_v7, 1  ;;  %v1318_v6 = vadd.f32 %v1317_v8, %v1316_v62 }
 0x519   :  { %v926_v41 = vadd.f32 %v925_v34, %v924_v7  ;;  %v1319_v33 = vrot.slane %v1318_v6, 4 }
 0x51b   :  { %v927_v2 = vadd.f32 %v1701_v17, %v926_v41  ;;  %v1320_v21 = vadd.f32 %v1319_v33, %v1318_v6  ;;  %v1449_v41 = vld [vmem:[#allocation9 + $0x78] sm:$0xff]  ;;  %v1447_v33 = vld [vmem:[#allocation9 + $0x68] sm:$0xff] }
 0x51c   :  { %1454 = vmatpush.msra.mxu0 %v1449_v41  ;;  %v1437_v41 = vld [vmem:[#allocation9 + $0x18] sm:$0xff] }
 0x51d   :  { %1702 = vrcp.f32 %v927_v2  ;;  %v1321_v25 = vrot.slane %v1320_v21, 2 }
 0x51e   :  { %1704 = vpow2.f32 %v1312_v1  ;;  %v1444_v1 = vld [vmem:[#allocation9 + $0x50] sm:$0xff] }
 0x51f   :  { %v1322_v39 = vadd.f32 %v1321_v25, %v1320_v21 }
 0x521   :  { %v1323_v16 = vrot.slane %v1322_v39, 1 }
 0x523   :  { %v1703_v46 = vpop.eup %1702  ;;  %v1324_v20 = vadd.f32 %v1323_v16, %v1322_v39  ;;  %v1441_v39 = vld [vmem:[#allocation9 + $0x38] sm:$0xff] }
 0x524   :  { %v932_v45 = vmul.f32 %v1703_v46, %v1701_v17  ;;  %v1705_v37 = vpop.eup %1704  ;;  %v930_v13 = vmul.f32 %v1703_v46, %v1691_v52  ;;  %v929_v8 = vmul.f32 %v1703_v46, %v1689_v53  ;;  %v931_v6 = vmul.f32 %v1703_v46, %v1693_v24  ;;  %v1448_v17 = vld [vmem:[#allocation9 + $0x70] sm:$0xff]  ;;  %v1442_v53 = vld [vmem:[#allocation9 + $0x40] sm:$0xff] }
 0x525   :  { %v1325_v50 = vadd.f32 %v1705_v37, %v1324_v20  ;;  %1455 = vmatpush.msra.mxu0 %v1448_v17 }
 0x526   :  { %v933_v18 = vadd.f32 1.0, %v932_v45  ;;  %v1440_v45 = vld [vmem:[#allocation9 + $0x30] sm:$0xff] }
 0x527   :  { %1706 = vrcp.f32 %v1325_v50  ;;  %1456 = vmatpush.msra.mxu0 %v1447_v33 }
 0x528   :  { %963 = vperm.xlu0 %1670, %v933_v18  }
 0x52d   :  { %v1707_v23 = vpop.eup %1706 }
 0x52e   :  { %v1328_v19 = vmul.f32 %v1707_v23, %v1699_v36  ;;  %v1327_v7 = vmul.f32 %v1707_v23, %v1695_v3  ;;  %v1330_v59 = vmul.f32 %v1707_v23, %v1705_v37  ;;  %v1329_v34 = vmul.f32 %v1707_v23, %v1697_v60  ;;  %v1446_v3 = vld [vmem:[#allocation9 + $0x60] sm:$0xff]  ;;  %v1445_v36 = vld [vmem:[#allocation9 + $0x58] sm:$0xff]  ;;  %v1443_v60 = vld [vmem:[#allocation9 + $0x48] sm:$0xff] }
 0x52f   :  { %1457 = vmatpush.msra.mxu0 %v1446_v3 }
 0x530   :  { %1339 = vperm.xlu2 %1672, %v1328_v19   ;;  %1334 = vperm.xlu1 %1671, %v1327_v7   ;;  %v1331_v62 = vadd.f32 1.0, %v1330_v59  ;;  %v1439_v19 = vld [vmem:[#allocation9 + $0x28] sm:$0xff] }
 0x531   :  { %1458 = vmatpush.msra.mxu0 %v1445_v36 }
 0x532   :  { %1361 = vperm.xlu0 %1670, %v1331_v62  }
 0x533   :  { %1459 = vmatpush.msra.mxu0 %v1444_v1 }
 0x535   :  { %1460 = vmatpush.msra.mxu0 %v1443_v60  ;;  %v1436_v60 = vld [vmem:[#allocation9 + $0x10] sm:$0xff] }
 0x537   :  { %1461 = vmatpush.msra.mxu0 %v1442_v53 }
 0x538   :  { %1344 = vperm.xlu1 %1671, %v1329_v34   ;;  %941 = vperm.xlu2 %1672, %v930_v13  }
 0x539   :  { %1462 = vmatpush.msra.mxu0 %v1441_v39 }
 0x53a   :  { %936 = vperm.xlu0 %1670, %v929_v8  }
 0x53b   :  { %1463 = vmatpush.msra.mxu0 %v1440_v45 }
 0x53d   :  { %1464 = vmatpush.msra.mxu0 %v1439_v19 }
 0x540   :  { %946 = vperm.xlu1 %1671, %v931_v6   ;;  %v1438_v6 = vld [vmem:[#allocation9 + $0x20] sm:$0xff] }
 0x541   :  { %1465 = vmatpush.msra.mxu0 %v1438_v6 }
 0x543   :  { %1466 = vmatpush.msra.mxu0 %v1437_v41 }
 0x545   :  { %1467 = vmatpush.msra.mxu0 %v1436_v60 }
 0x58a   :  { %v1340_v25 = vpop.permute.xlu2 %1339 }
 0x592   :  { %v942_v45 = vpop.permute.xlu2 %941 }
 0x59a   :  { %v2667_v52 = vpop.permute.xlu0 %963 }
 0x59b   :  { %v966_v24 = vmul.f32 %v2667_v52, %v2095_v30  ;;  %v967_v2 = vmul.f32 %v2667_v52, %v2089_v28  ;;  %v968_v21 = vmul.f32 %v2667_v52, %v2100_v32  ;;  %v969_v16 = vmul.f32 %v2667_v52, %v2114_v38 }
 0x59c   :  { %v970_v46 = vmul.f32 %v2667_v52, %v2143_v51  ;;  %v971_v20 = vmul.f32 %v2667_v52, %v2148_v54  ;;  %v972_v23 = vmul.f32 %v2667_v52, %v2160_v58  ;;  %v973_v62 = vmul.f32 %v2667_v52, %v2182_v9  ;;  %v3068_v9 = vld [vmem:[#allocation24_spill] sm:$0xff] }
 0x59d   :  { %v998_v37 = vperm.slane %v966_v24, %v2097_v31  ;;  %v999_v18 = vperm.slane %v967_v2, %v2123_v42  ;;  %v1001_v50 = vperm.slane %v968_v21, %v2126_v43  ;;  %v1003_v59 = vperm.slane %v969_v16, %v2135_v48  ;;  %v534_v2 = vld [vmem:[#allocation6 + $0x8] sm:$0xff]  ;;  %v533_v21 = vld [vmem:[#allocation6] sm:$0xff] }
 0x59e   :  { %v1005_v13 = vperm.slane %v970_v46, %v2154_v56  ;;  %v1007_v33 = vperm.slane %v971_v20, %v2157_v57  ;;  %v1009_v36 = vperm.slane %v972_v23, %v2185_v10  ;;  %v974_v53 = vmul.f32 %v2667_v52, %v2215_v40  ;;  %v1435_v20 = vld [vmem:[#allocation9 + $0x8] sm:$0xff] }
 0x59f   :  { %v1000_v7 = vsel %vm356_vm2, %v999_v18, %v998_v37  ;;  %v975_v39 = vmul.f32 %v2667_v52, %v2232_v47  ;;  %v1011_v46 = vperm.slane %v973_v62, %v2190_v12  ;;  %v976_v37 = vmul.f32 %v2667_v52, %v2254_v0  ;;  %v535_v62 = vld [vmem:[#allocation6 + $0x10] sm:$0xf]  ;;  %1468 = vmatpush.msra.mxu0 %v1435_v20 }
 0x5a0   :  { %v1002_v34 = vsel %vm360_vm3, %v1001_v50, %v1000_v7  ;;  %v1348_v7 = vmul.f32 %v1340_v25, %v534_v2  ;;  %v1013_v6 = vperm.slane %v974_v53, %v2195_v15  ;;  %v950_v41 = vmul.f32 %v942_v45, %v534_v2  ;;  %v3063_v2 = vld [vmem:[#allocation16_spill] sm:$0xff]  ;;  %v3067_v47 = vld [vmem:[#allocation22_spill] sm:$0xff] }
 0x5a1   :  { %v1004_v17 = vsel %vm364_vm4, %v1003_v59, %v1002_v34  ;;  %v1434_v34 = vld [vmem:[#allocation9] sm:$0xff] }
 0x5a2   :  { %v1335_v8 = vpop.permute.xlu1 %1334  ;;  %v1006_v3 = vsel %vm368_vm5, %v1005_v13, %v1004_v17  ;;  %v2716_v13 = vmul.f32 %v2667_v52, %v2262_v14  ;;  %v2721_v17 = vmul.f32 %v2667_v52, %v2278_v63  ;;  %1469 = vmatpush.msra.mxu0 %v1434_v34 }
 0x5a3   :  { %v1008_v24 = vsel %vm372_vm6, %v1007_v33, %v1006_v3  ;;  %v1347_v59 = vmul.f32 %v1335_v8, %v533_v21  ;;  %v1015_v33 = vperm.slane %v975_v39, %v2222_v44 }
 0x5a4   :  { %v2696_v1 = vpop.permute.xlu0 %1361  ;;  %v1010_v16 = vsel %vm376_vm7, %v1009_v36, %v1008_v24  ;;  %v1017_v36 = vperm.slane %v976_v37, %v2235_v22  ;;  %v1019_v20 = vperm.slane %v2716_v13, %v3050_v5 }
 0x5a5   :  { %v1364_v18 = vmul.f32 %v2696_v1, %v2092_v29  ;;  %v1012_v50 = vsel %vm380_vm8, %v1011_v46, %v1010_v16  ;;  %v1365_v23 = vmul.f32 %v2696_v1, %v2086_v27  ;;  %v1366_v19 = vmul.f32 %v2696_v1, %v2107_v35 }
 0x5a6   :  { %v1367_v25 = vmul.f32 %v2696_v1, %v2138_v49  ;;  %v1014_v3 = vsel %vm384_vm9, %v1013_v6, %v1012_v50  ;;  %v1368_v60 = vmul.f32 %v2696_v1, %v2151_v55  ;;  %v1369_v16 = vmul.f32 %v2696_v1, %v3063_v2  ;;  %v3064_v50 = vld [vmem:[#allocation17_spill] sm:$0xff]  ;;  %v3065_v6 = vld [vmem:[#allocation19_spill] sm:$0xff] }
 0x5a7   :  { %v1396_v53 = vperm.slane %v1364_v18, %v2097_v31  ;;  %v1397_v39 = vperm.slane %v1365_v23, %v2123_v42  ;;  %v1399_v46 = vperm.slane %v1366_v19, %v2126_v43  ;;  %v1350_v45 = vadd.f32 %v1348_v7, %v1347_v59  ;;  %v3066_v7 = vld [vmem:[#allocation21_spill] sm:$0xff] }
 0x5a8   :  { %v1370_v37 = vmul.f32 %v2696_v1, %v3064_v50  ;;  %v1371_v63 = vmul.f32 %v2696_v1, %v3065_v6  ;;  %v1401_v23 = vperm.slane %v1367_v25, %v2135_v48  ;;  %v1372_v59 = vmul.f32 %v2696_v1, %v3066_v7 }
 0x5a9   :  { %v1398_v14 = vsel %vm356_vm2, %v1397_v39, %v1396_v53  ;;  %v1403_v0 = vperm.slane %v1368_v60, %v2154_v56  ;;  %v1373_v40 = vmul.f32 %v2696_v1, %v3067_v47 }
 0x5aa   :  { %v1345_v8 = vpop.permute.xlu1 %1344  ;;  %v1400_v13 = vsel %vm360_vm3, %v1399_v46, %v1398_v14  ;;  %v3069_v46 = vld [vmem:[#allocation27_spill] sm:$0xff]  ;;  %v1409_v47 = vperm.slane %v1371_v63, %v2190_v12 }
 0x5ab   :  { %v1349_v24 = vmul.f32 %v1345_v8, %v535_v62  ;;  %v1016_v8 = vsel %vm388_vm10, %v1015_v33, %v1014_v3  ;;  %v1402_v33 = vsel %vm364_vm4, %v1401_v23, %v1400_v13  ;;  %v1405_v3 = vperm.slane %v1369_v16, %v2157_v57  ;;  %v3070_v23 = vld [vmem:[#allocation29_spill] sm:$0xff] }
 0x5ac   :  { %v937_v34 = vpop.permute.xlu0 %936  ;;  %v1404_v39 = vsel %vm368_vm5, %v1403_v0, %v1402_v33  ;;  %v1018_v14 = vsel %vm392_vm11, %v1017_v36, %v1016_v8  ;;  %v1375_v60 = vmul.f32 %v2696_v1, %v3069_v46  ;;  %v1376_v16 = vmul.f32 %v2696_v1, %v3070_v23 }
 0x5ad   :  { %v1351_v18 = vsel %vm880_vm13, %v1349_v24, 0.0  ;;  %v1374_v24 = vmul.f32 %v2696_v1, %v3068_v9  ;;  %v949_v25 = vmul.f32 %v937_v34, %v533_v21  ;;  %v1411_v0 = vperm.slane %v1372_v59, %v2195_v15 }
 0x5ae   :  { %v1352_v19 = vadd.f32 %v1351_v18, %v1350_v45  ;;  %v1407_v45 = vperm.slane %v1370_v37, %v2185_v10  ;;  %v1406_v18 = vsel %vm372_vm6, %v1405_v3, %v1404_v39  ;;  %v3071_v37 = vld [vmem:[#allocation32_spill] sm:$0xff]  ;;  %v1413_v13 = vperm.slane %v1373_v40, %v2222_v44  ;;  %v3072_v39 = vld [vmem:[#allocation34_spill] sm:$0xff] }
 0x5af   :  { %v1377_v36 = vmul.f32 %v2696_v1, %v3071_v37  ;;  %v952_v3 = vadd.f32 %v950_v41, %v949_v25  ;;  %v1419_v40 = vperm.slane %v1376_v16, %v3051_v4  ;;  %v3073_v41 = vld [vmem:[#allocation31_spill] sm:$0xff] }
 0x5b0   :  { %v1353_v53 = vrot.slane %v1352_v19, 4  ;;  %v1408_v21 = vsel %vm376_vm7, %v1407_v45, %v1406_v18  ;;  %v1378_v45 = vmul.f32 %v2696_v1, %v3072_v39  ;;  %v979_v25 = vmul.f32 %v2667_v52, %v3073_v41 }
 0x5b1   :  { %v1410_v8 = vsel %vm380_vm8, %v1409_v47, %v1408_v21 }
 0x5b2   :  { %v1354_v9 = vadd.f32 %v1353_v53, %v1352_v19  ;;  %v947_v7 = vpop.permute.xlu1 %946  ;;  %v1412_v63 = vsel %vm384_vm9, %v1411_v0, %v1410_v8  ;;  %v1415_v19 = vperm.slane %v1374_v24, %v2235_v22  ;;  %v1020_v24 = vsel %vm3074_vm1, %v1019_v20, %v1018_v14  ;;  %vm3083_vm1 = vmmov %vm3078_vm14 }
 0x5b3   :  { %v951_v34 = vmul.f32 %v947_v7, %v535_v62  ;;  %v1414_v62 = vsel %vm388_vm10, %v1413_v13, %v1412_v63  ;;  %v1417_v7 = vperm.slane %v1375_v60, %v3050_v5  ;;  %v1421_v0 = vperm.slane %v1377_v36, %v2322_v26  ;;  %v3077_v13 = vld [vmem:[#allocation36_spill] sm:$0xff]  ;;  %v3079_v63 = vld [vmem:[#allocation33_spill] sm:$0xff] }
 0x5b4   :  { %v1355_v33 = vrot.slane %v1354_v9, 2  ;;  %v1416_v47 = vsel %vm392_vm11, %v1415_v19, %v1414_v62  ;;  %v1021_v60 = vperm.slane %v2721_v17, %v3051_v4  ;;  %v980_v20 = vmul.f32 %v2667_v52, %v3079_v63 }
 0x5b5   :  { %v953_v53 = vsel %vm880_vm13, %v951_v34, 0.0  ;;  %v1418_v21 = vsel %vm3075_vm12, %v1417_v7, %v1416_v47  ;;  %vm3076_vm13 = vcmask 851712   ;;  %v1423_v36 = vperm.slane %v1378_v45, %v2336_v11  ;;  %v3082_v7 = vld [vmem:[#allocation37_spill] sm:$0xff] }
 0x5b6   :  { %v1356_v59 = vadd.f32 %v1355_v33, %v1354_v9  ;;  %v954_v18 = vadd.f32 %v953_v53, %v952_v3  ;;  %v1420_v9 = vsel %vm3076_vm13, %v1419_v40, %v1418_v21  ;;  %v1379_v33 = vmul.f32 %v2696_v1, %v3077_v13  ;;  %vm3080_vm15 = vmmov %vm3076_vm13 }
 0x5b7   :  { %v1422_v16 = vsel %vm3078_vm14, %v1421_v0, %v1420_v9  ;;  %v1022_v14 = vsel %vm3080_vm15, %v1021_v60, %v1020_v24  ;;  %v1023_v19 = vperm.slane %v979_v25, %v2322_v26  ;;  %v981_v47 = vmul.f32 %v2667_v52, %v3082_v7  ;;  %vm3085_vm13 = vmmov %vm3081_vm0 }
 0x5b8   :  { %v1357_v34 = vrot.slane %v1356_v59, 1  ;;  %v955_v8 = vrot.slane %v954_v18, 4  ;;  %v1424_v17 = vsel %vm3081_vm0, %v1423_v36, %v1422_v16  ;;  %v1025_v21 = vperm.slane %v980_v20, %v2336_v11 }
 0x5b9   :  { %v1024_v1 = vsel %vm3083_vm1, %v1023_v19, %v1022_v14  ;;  %vm3084_vm12 = vcmask 1048512   ;;  %vm1432_vm15 = vcmask 1040384   ;;  %v1508_v16 = vperm.slane %v2089_v28, %v2123_v42 }
 0x5ba   :  { %v956_v3 = vadd.f32 %v955_v8, %v954_v18  ;;  %v1358_v53 = vadd.f32 %v1357_v34, %v1356_v59  ;;  %v1425_v18 = vperm.slane %v1379_v33, %v3055_v61  ;;  %v1026_v45 = vsel %vm3085_vm13, %v1025_v21, %v1024_v1  ;;  %vm3086_vm14 = vmmov %vm3084_vm12  ;;  %v3091_v21 = vld [vmem:[#allocation23_spill] sm:$0xff] }
 0x5bb   :  { %v1027_v59 = vperm.slane %v981_v47, %v3055_v61  ;;  %v1539_v33 = vperm.slane %v2086_v27, %v2123_v42  ;;  %v1507_v20 = vperm.slane %v2095_v30, %v2097_v31  ;;  %v1541_v14 = vperm.slane %v2107_v35, %v2126_v43 }
 0x5bc   :  { %v957_v62 = vrot.slane %v956_v3, 2  ;;  %v1426_v24 = vsel %vm3084_vm12, %v1425_v18, %v1424_v17  ;;  %v1512_v27 = vperm.slane %v2114_v38, %v2135_v48  ;;  %v1510_v28 = vperm.slane %v2100_v32, %v2126_v43  ;;  %v3087_v17 = vld [vmem:[#allocation18_spill] sm:$0xff] }
 0x5bd   :  { %v1428_v25 = vadd.f32 %v1426_v24, %v1358_v53  ;;  %v1028_v8 = vsel %vm3086_vm14, %v1027_v59, %v1026_v45  ;;  %v1509_v19 = vsel %vm356_vm2, %v1508_v16, %v1507_v20  ;;  %v1543_v53 = vperm.slane %v2138_v49, %v2135_v48  ;;  %v3090_v18 = vld [vmem:[#allocation22_spill] sm:$0xff] }
 0x5be   :  { %v958_v40 = vadd.f32 %v957_v62, %v956_v3  ;;  %v1538_v3 = vperm.slane %v2092_v29, %v2097_v31  ;;  %v1545_v29 = vperm.slane %v2151_v55, %v2154_v56  ;;  %v1511_v31 = vsel %vm360_vm3, %v1510_v28, %v1509_v19 }
 0x5bf   :  { %v1430_v60 = vrot.slane %v1428_v25, 7  ;;  %v1514_v35 = vperm.slane %v2143_v51, %v2154_v56  ;;  %v1513_v49 = vsel %vm364_vm4, %v1512_v27, %v1511_v31  ;;  %v1516_v38 = vperm.slane %v2148_v54, %v2157_v57 }
 0x5c0   :  { %v959_v0 = vrot.slane %v958_v40, 1  ;;  %v1540_v36 = vsel %vm356_vm2, %v1539_v33, %v1538_v3  ;;  %v1547_v32 = vperm.slane %v3063_v2, %v2157_v57  ;;  %v1549_v48 = vperm.slane %v3064_v50, %v2185_v10  ;;  %v3088_v50 = vld [vmem:[#allocation20_spill] sm:$0xff]  ;;  %v3095_v3 = vld [vmem:[#allocation30_spill] sm:$0xff] }
 0x5c1   :  { %v1542_v30 = vsel %vm360_vm3, %v1541_v14, %v1540_v36  ;;  %v1518_v55 = vperm.slane %v2160_v58, %v2185_v10  ;;  %v1551_v51 = vperm.slane %v3065_v6, %v2190_v12  ;;  %v1515_v56 = vsel %vm368_vm5, %v1514_v35, %v1513_v49  ;;  %v3089_v58 = vld [vmem:[#allocation21_spill] sm:$0xff] }
 0x5c2   :  { %v960_v34 = vadd.f32 %v959_v0, %v958_v40  ;;  %v1544_v42 = vsel %vm364_vm4, %v1543_v53, %v1542_v30  ;;  %v1517_v62 = vsel %vm372_vm6, %v1516_v38, %v1515_v56  ;;  %v1520_v57 = vperm.slane %v3087_v17, %v2190_v12  ;;  %v3092_v12 = vld [vmem:[#allocation24_spill] sm:$0xff]  ;;  %v1613_v56 = vld [vmem:[%s2975_s15 + $0x48] sm:$0xff] }
 0x5c3   :  { %v1546_v43 = vsel %vm368_vm5, %v1545_v29, %v1544_v42  ;;  %v1519_v47 = vsel %vm376_vm7, %v1518_v55, %v1517_v62  ;;  %v1522_v1 = vperm.slane %v3088_v50, %v2195_v15  ;;  %v1553_v10 = vperm.slane %v3089_v58, %v2195_v15  ;;  %v1619_v49 = vld [vmem:[%s2975_s15 + $0x78] sm:$0xff]  ;;  %v1618_v38 = vld [vmem:[%s2975_s15 + $0x70] sm:$0xff]  ;;  %v1612_v62 = vld [vmem:[%s2975_s15 + $0x40] sm:$0xff] }
 0x5c4   :  { %v1030_v52 = vadd.f32 %v1028_v8, %v960_v34  ;;  %v1548_v54 = vsel %vm372_vm6, %v1547_v32, %v1546_v43  ;;  %v1555_v40 = vperm.slane %v3090_v18, %v2222_v44  ;;  %v1524_v24 = vperm.slane %v3091_v21, %v2222_v44  ;;  %v3093_v34 = vld [vmem:[#allocation25_spill] sm:$0xff]  ;;  %vm3100_vm6 = vmmov %vm3083_vm1  ;;  %1620 = vmatpush.msra.mxu1 %v1619_v49  ;;  %v1617_v32 = vld [vmem:[%s2975_s15 + $0x68] sm:$0xff] }
 0x5c5   :  { %v1550_v2 = vsel %vm376_vm7, %v1549_v48, %v1548_v54  ;;  %v1557_v0 = vperm.slane %v3092_v12, %v2235_v22  ;;  %v1521_v45 = vsel %vm380_vm8, %v1520_v57, %v1519_v47  ;;  %v1526_v15 = vperm.slane %v3093_v34, %v2235_v22  ;;  %vm3101_vm7 = vmmov %vm3083_vm1  ;;  %v1616_v43 = vld [vmem:[%s2975_s15 + $0x60] sm:$0xff]  ;;  %v1615_v48 = vld [vmem:[%s2975_s15 + $0x58] sm:$0xff] }
 0x5c6   :  { %v1433_v9 = vsel %vm1432_vm15, %v1030_v52, %v1430_v60  ;;  %v1552_v6 = vsel %vm380_vm8, %v1551_v51, %v1550_v2  ;;  %v1523_v25 = vsel %vm384_vm9, %v1522_v1, %v1521_v45  ;;  %v3094_v60 = vld [vmem:[#allocation26_spill] sm:$0xff]  ;;  %v1559_v44 = vperm.slane %v3069_v46, %v3050_v5  ;;  %vm3102_vm8 = vmmov %vm3081_vm0  ;;  %1621 = vmatpush.msra.mxu1 %v1618_v38  ;;  %v1614_v55 = vld [vmem:[%s2975_s15 + $0x50] sm:$0xff] }
 0x5c7   :  { %1470 = vmatmul.f32.vlgmr.msra.gmra.mxu0 %v1433_v9  ;;  %v1554_v59 = vsel %vm384_vm9, %v1553_v10, %v1552_v6  ;;  %v1525_v52 = vsel %vm388_vm10, %v1524_v24, %v1523_v25  ;;  %v1528_v9 = vperm.slane %v3094_v60, %v3050_v5  ;;  %v1561_v16 = vperm.slane %v3070_v23, %v3051_v4  ;;  %vm3103_vm9 = vmmov %vm3081_vm0  ;;  %v1611_v54 = vld [vmem:[%s2975_s15 + $0x38] sm:$0xff]  ;;  %v1610_v17 = vld [vmem:[%s2975_s15 + $0x30] sm:$0xff] }
 0x5c8   :  { %v1556_v8 = vsel %vm388_vm10, %v1555_v40, %v1554_v59  ;;  %v1530_v20 = vperm.slane %v3095_v3, %v3051_v4  ;;  %v1563_v22 = vperm.slane %v3071_v37, %v2322_v26  ;;  %v1527_v14 = vsel %vm392_vm11, %v1526_v15, %v1525_v52  ;;  %vm3104_vm10 = vmmov %vm3084_vm12  ;;  %1622 = vmatpush.msra.mxu1 %v1617_v32  ;;  %v1609_v47 = vld [vmem:[%s2975_s15 + $0x28] sm:$0xff]  ;;  %v1608_v1 = vld [vmem:[%s2975_s15 + $0x20] sm:$0xff] }
 0x5c9   :  { %v1558_v33 = vsel %vm392_vm11, %v1557_v0, %v1556_v8  ;;  %vm3096_vm2 = vcmask 786112   ;;  %v1532_v5 = vperm.slane %v3073_v41, %v2322_v26  ;;  %v1534_v46 = vperm.slane %v3079_v63, %v2336_v11  ;;  %v1679_v26 = vld [vmem:[%s2974_s14] ss:$0 sm:$0xff]  ;;  %vm3105_vm11 = vmmov %vm3104_vm10  ;;  %v1607_v10 = vld [vmem:[%s2975_s15 + $0x18] sm:$0xff] }
 0x5ca   :  { %v1529_v36 = vsel %vm3096_vm2, %v1528_v9, %v1527_v14  ;;  %vm3097_vm3 = vmmov %vm3096_vm2  ;;  %v1565_v23 = vperm.slane %v3072_v39, %v2336_v11  ;;  %vm3098_vm4 = vcmask 851712   ;;  %v1567_v37 = vperm.slane %v3077_v13, %v3055_v61  ;;  %1623 = vmatpush.msra.mxu1 %v1616_v43  ;;  %v1606_v18 = vld [vmem:[%s2975_s15 + $0x10] sm:$0xff]  ;;  %v1605_v21 = vld [vmem:[%s2975_s15 + $0x8] sm:$0xff] }
 0x5cb   :  { %v1560_v19 = vsel %vm3097_vm3, %v1559_v44, %v1558_v33  ;;  %v1531_v4 = vsel %vm3098_vm4, %v1530_v20, %v1529_v36  ;;  %vm3099_vm5 = vmmov %vm3098_vm4  ;;  %v1536_v27 = vperm.slane %v3082_v7, %v3055_v61  ;;  %vm3106_vm0 = vcmask 1041409   ;;  %v1604_v12 = vld [vmem:[%s2975_s15] sm:$0xff]  ;;  %s1848_s15 = smov [#allocation11]  }
 0x5cc   :  { %v1562_v53 = vsel %vm3099_vm5, %v1561_v16, %v1560_v19  ;;  %v1533_v63 = vsel %vm3101_vm7, %v1532_v5, %v1531_v4  ;;  %vm3107_vm1 = vcmask 1041408   ;;  %1624 = vmatpush.msra.mxu1 %v1615_v48  ;;  %s1647_s30 = sshll.u32 %s1848_s15, 4  ;;  %vm1640_vm4 = vcmask 123904   ;;  %s1648_s30 = int_to_ptr.vmem [resolvable:$true] %s1647_s30 }
 0x5cd   :  { %v1564_v41 = vsel %vm3100_vm6, %v1563_v22, %v1562_v53  ;;  %v1535_v11 = vsel %vm3102_vm8, %v1534_v46, %v1533_v63 }
 0x5ce   :  { %v1566_v39 = vsel %vm3103_vm9, %v1565_v23, %v1564_v41  ;;  %v1537_v30 = vsel %vm3104_vm10, %v1536_v27, %v1535_v11  ;;  %1625 = vmatpush.msra.mxu1 %v1614_v55 }
 0x5cf   :  { %v1568_v13 = vsel %vm3105_vm11, %v1567_v37, %v1566_v39 }
 0x5d0   :  { %v1569_v61 = vsel %vm3106_vm0, %v1568_v13, %v1537_v30  ;;  %1626 = vmatpush.msra.mxu1 %v1613_v56 }
 0x5d2   :  { %1627 = vmatpush.msra.mxu1 %v1612_v62 }
 0x5d4   :  { %1628 = vmatpush.msra.mxu1 %v1611_v54 }
 0x5d6   :  { %1629 = vmatpush.msra.mxu1 %v1610_v17 }
 0x5d8   :  { %1630 = vmatpush.msra.mxu1 %v1609_v47 }
 0x5da   :  { %1631 = vmatpush.msra.mxu1 %v1608_v1 }
 0x5dc   :  { %1632 = vmatpush.msra.mxu1 %v1607_v10 }
 0x5de   :  { %1633 = vmatpush.msra.mxu1 %v1606_v18 }
 0x5e0   :  { %1634 = vmatpush.msra.mxu1 %v1605_v21 }
 0x5e2   :  { %1635 = vmatpush.msra.mxu1 %v1604_v12 }
 0x644   :  { %v1471_v28 = vpop.f32.mrf.mxu0 }
 0x645   :  { %v1472_v29 = vadd.f32 %v1679_v26, %v1471_v28 }
 0x647   :  { %v1474_v31 = vmax.f32 %v1472_v29, 0.0 }
 0x649   :  { %v2903_v7 = vadd.f32 %v1569_v61, %v1474_v31 }
 0x64b   :  { %v1572_v35 = vmul.f32 %v2903_v7, %v2903_v7 }
 0x64d   :  { %v1573_v42 = vsel %vm3107_vm1, %v1572_v35, 0.0 }
 0x64e   :  { %1574 = vadd.xlane.f32.xlu0 %v1573_v42 }
 0x6c1   :  { %v1575_v51 = vpop.xlane.xlu0 %1574 }
 0x6c2   :  { %1708 = vrsqrt.f32 %v1575_v51  ;;  %vm1583_vm12 = vcmp.eq.f32.partialorder %v1575_v51, inf  ;;  %v1586_v0 = vand.u32 2147483648, %v1575_v51  ;;  %vm1585_vm13 = vcmp.eq.f32.partialorder %v1575_v51, 0.0 }
 0x6c8   :  { %v1709_v57 = vpop.eup %1708 }
 0x6c9   :  { %v1577_v2 = vmul.f32 %v1709_v57, %v1575_v51 }
 0x6cb   :  { %v1578_v50 = vmul.f32 %v1709_v57, %v1577_v2 }
 0x6cd   :  { %v1579_v58 = vmul.f32 0.5, %v1578_v50 }
 0x6cf   :  { %v1580_v6 = vsub.f32 1.5, %v1579_v58 }
 0x6d1   :  { %v1581_v40 = vmul.f32 %v1709_v57, %v1580_v6 }
 0x6d3   :  { %v1582_v24 = vmul.f32 %v1581_v40, %v1575_v51 }
 0x6d5   :  { %v1584_v45 = vsel %vm1583_vm12, %v1575_v51, %v1582_v24 }
 0x6d6   :  { %v1587_v25 = vsel %vm1585_vm13, %v1586_v0, %v1584_v45 }
 0x6d7   :  { %v1588_v59 = vmax.f32 %v1587_v25, 1e-12 }
 0x6d9   :  { %1710 = vrcp.f32 %v1588_v59  ;;  %v1600_v52 = vand.u32 2147483648, %v1588_v59  ;;  %v1598_v9 = vand.u32 2147483647, %v1588_v59  ;;  %vm1594_vm15 = vweird.f32 %v1588_v59 }
 0x6db   :  { %v1601_v33 = vor.u32 1.1754944e-38, %v1600_v52  ;;  %vm1599_vm3 = vcmp.eq.f32.partialorder %v1598_v9, 8.507059e+37 }
 0x6df   :  { %v1711_v34 = vpop.eup %1710 }
 0x6e0   :  { %v1590_v15 = vmul.f32 %v1711_v34, %v1588_v59  ;;  %vm1595_vm14 = vweird.f32 %v1711_v34 }
 0x6e1   :  { %vm1596_vm2 = vmor %vm1594_vm15, %vm1595_vm14 }
 0x6e2   :  { %v1591_v8 = vsub.f32 1.0, %v1590_v15 }
 0x6e4   :  { %v1592_v60 = vmul.f32 %v1711_v34, %v1591_v8 }
 0x6e6   :  { %v1593_v44 = vadd.f32 %v1711_v34, %v1592_v60 }
 0x6e8   :  { %v1597_v16 = vsel %vm1596_vm2, %v1711_v34, %v1593_v44 }
 0x6e9   :  { %v1602_v3 = vsel %vm1599_vm3, %v1601_v33, %v1597_v16 }
 0x6ea   :  { %v1603_v20 = vmul.f32 %v1602_v3, %v2903_v7 }
 0x6ec   :  { %1636 = vmatmul.f32.vlgmr.msra.gmra.mxu1 %v1603_v20 }
 0x769   :  { %v1637_v22 = vpop.f32.mrf.mxu1 }
 0x76a   :  { %1641 = vst.msk [vmem:[#allocation11] sm:$0x3] %vm1640_vm4, %v1637_v22 }
 0x76b   :  { %1652 = dma.vmem_to_hbm [thread:$0]  %s1648_s30, 32, %s1650_s28, [#allocation5]  }
 0x76c   :  { %1838 = dma.done.wait [#allocation5], 32  }
 0x76d   :  { %1839 = vsyncadd [#allocation5], 4294967264 }
 0x76e   :  { %1657 = vsyncpa [#allocation4], 1 }
 0x76f   :  { %1658 = vsyncpa [#allocation7], 1 }
 0x770   :  { %1659 = vsyncpa [#allocation10], 1 }
 0x771   :  { %1660 = vsyncpa [#allocation5], 1 }

</bundles_post_ra>
